<compile_context>
chip_gen: v7x
topology: tpu7x:2x2x1
jax: 0.10.0
libtpu: 0.0.40
codegen_flags: <defaults>
</compile_context>

<pallas_src>
import functools
import math

import jax
import jax.numpy as jnp
import numpy as np
from jax import lax
from jax.experimental import pallas as pl
from jax.experimental.pallas import tpu as pltpu

_EPS = 1e-5                     # torch.nn.LayerNorm default eps
_MAX_ROW_TILE = 2048            # rows per grid step (sweepable; block footprint stays small)
_ACT_DTYPE = jnp.bfloat16       # hidden activations between kernels (halves HBM traffic)
_COMPUTE_DTYPE = jnp.bfloat16   # MXU input dtype on the hot path (accumulation stays f32)


# ---------------------------------------------------------------------------
# In-kernel helpers
# ---------------------------------------------------------------------------
def _layer_norm(h, gamma, beta):
    """LayerNorm over the last dim, f32, one-pass statistics (var = E[x^2] - E[x]^2)."""
    mean = jnp.mean(h, axis=-1, keepdims=True)
    var = jnp.maximum(jnp.mean(h * h, axis=-1, keepdims=True) - mean * mean, 0.0)
    return (h - mean) * lax.rsqrt(var + _EPS) * gamma + beta


# ---------------------------------------------------------------------------
# Pallas kernels
# ---------------------------------------------------------------------------
def _mlp_ln_kernel(x_ref, w1_ref, b1_ref, w2_ref, b2_ref, g_ref, beta_ref, o_ref):
    """Encoder MLP: Linear -> ReLU -> Linear -> ReLU -> LayerNorm (f32 compute, tiny din)."""
    h = jnp.dot(x_ref[...], w1_ref[...], preferred_element_type=jnp.float32) + b1_ref[...]
    h = jnp.maximum(h, 0.0)
    h = jnp.dot(h, w2_ref[...], preferred_element_type=jnp.float32) + b2_ref[...]
    h = jnp.maximum(h, 0.0)
    o_ref[...] = _layer_norm(h, g_ref[...], beta_ref[...]).astype(o_ref.dtype)


def _node_net_kernel(a_ref, x_ref, w1a_ref, w1b_ref, b1_ref,
                     w2_ref, b2_ref, g_ref, beta_ref, o_ref):
    """node_net(cat[aggr, x]) without materializing the concat (W1 split per operand).

    bf16 MXU inputs, f32 accumulation, f32 bias/ReLU/LayerNorm.
    """
    h = (jnp.dot(a_ref[...].astype(_COMPUTE_DTYPE), w1a_ref[...],
                 preferred_element_type=jnp.float32)
         + jnp.dot(x_ref[...].astype(_COMPUTE_DTYPE), w1b_ref[...],
                   preferred_element_type=jnp.float32)
         + b1_ref[...])
    h = jnp.maximum(h, 0.0)
    h = jnp.dot(h.astype(_COMPUTE_DTYPE), w2_ref[...],
                preferred_element_type=jnp.float32) + b2_ref[...]
    h = jnp.maximum(h, 0.0)
    o_ref[...] = _layer_norm(h, g_ref[...], beta_ref[...]).astype(o_ref.dtype)


def _edge_dual_kernel(xc_ref, xr_ref, e_ref, w1ab_ref, w1c_ref, b1_ref,
                      w2_ref, b2_ref, g_ref, beta_ref, o_ref):
    """Both edge_net evaluations (message + edge update) in one pass.

    msg   = edge_net(cat[x_i, x_j, e])       with x_i = x[col] (target), x_j = x[row] (source)
    e_new = edge_net(cat[x[row], x[col], e])
    One (2T, H) @ (H, 2H) dot against W1ab = [W1a | W1b] yields all four partial products
    (ca|cb on the x_col rows, ra|rb on the x_row rows); the tail (ReLU -> W2 -> ReLU -> LN)
    runs once on the row-stacked block; output is a lane-dense (T, 2H) slab [msg | e_new].
    """
    t = xc_ref.shape[0]
    hdim = w1c_ref.shape[1]
    xc = xc_ref[...].astype(_COMPUTE_DTYPE)      # x[col] = x_i (target)
    xr = xr_ref[...].astype(_COMPUTE_DTYPE)      # x[row] = x_j (source)
    p = jnp.dot(jnp.concatenate([xc, xr], axis=0), w1ab_ref[...],
                preferred_element_type=jnp.float32)                     # (2T, 2H)
    base = jnp.dot(e_ref[...].astype(_COMPUTE_DTYPE), w1c_ref[...],
                   preferred_element_type=jnp.float32) + b1_ref[...]    # shared e @ W1c + b1
    ca, cb = p[:t, :hdim], p[:t, hdim:]
    ra, rb = p[t:, :hdim], p[t:, hdim:]
    h = jnp.concatenate([ca + rb + base,          # msg   pre-activation: cat[x_col, x_row, e]
                         ra + cb + base], axis=0)  # e_new pre-activation: cat[x_row, x_col, e]
    h = jnp.maximum(h, 0.0)
    h = jnp.dot(h.astype(_COMPUTE_DTYPE), w2_ref[...],
                preferred_element_type=jnp.float32) + b2_ref[...]
    h = jnp.maximum(h, 0.0)
    h = _layer_norm(h, g_ref[...], beta_ref[...])
    o_ref[...] = jnp.concatenate([h[:t], h[t:]], axis=1).astype(o_ref.dtype)  # [msg | e_new]


def _mlp_kernel(x_ref, w1_ref, b1_ref, w2_ref, b2_ref, o_ref):
    """Final node head: Linear -> ReLU -> Linear (f32 compute, no LayerNorm)."""
    x = x_ref[...].astype(jnp.float32)
    h = jnp.dot(x, w1_ref[...], preferred_element_type=jnp.float32) + b1_ref[...]
    h = jnp.maximum(h, 0.0)
    o = jnp.dot(h, w2_ref[...], preferred_element_type=jnp.float32) + b2_ref[...]
    o_ref[...] = o.astype(o_ref.dtype)


# ---------------------------------------------------------------------------
# pallas_call wrappers (row tiling, no padding / slicing round trips)
# ---------------------------------------------------------------------------
def _round_up(x, m):
    return ((x + m - 1) // m) * m


def _row_tiling(n):
    """Largest sublane-aligned row tile, capped at ceil(n/2) so the "parallel" grid axis has
    >= 2 steps (both v7x TensorCores busy). Ragged tails are handled by the grid itself."""
    if n < 8:
        return n, 1                                   # full-dim block, single step
    tile = min(_MAX_ROW_TILE, _round_up(-(-n // 2), 8))
    return tile, pl.cdiv(n, tile)


def _row_spec(tile, width):
    return pl.BlockSpec((tile, width), lambda i: (i, 0))


def _bcast_spec(shape):
    # TODO(synk): pipeline_mode=pl.Buffered(1) would drop double-buffering of these
    # grid-invariant weight blocks; left at the default for conservative lowering.
    return pl.BlockSpec(shape, lambda i: (0, 0))


_PARALLEL = pltpu.CompilerParams(dimension_semantics=("parallel",))


def _cost(flops, operands, out_shape, out_dtype, transcendentals=0):
    nbytes = sum(int(a.size) * a.dtype.itemsize for a in operands)
    nbytes += int(math.prod(out_shape)) * np.dtype(out_dtype).itemsize
    return pl.CostEstimate(flops=int(flops), transcendentals=int(transcendentals),
                           bytes_accessed=int(nbytes))


def mlp_ln_apply(params, x):
    w1, b1, w2, b2, gamma, beta = params
    n = x.shape[0]
    tile, grid = _row_tiling(n)
    din, h1 = w1.shape
    dout = w2.shape[1]
    return pl.pallas_call(
        _mlp_ln_kernel,
        out_shape=jax.ShapeDtypeStruct((n, dout), _ACT_DTYPE),
        grid=(grid,),
        in_specs=[
            _row_spec(tile, din),
            _bcast_spec((din, h1)), _bcast_spec((1, h1)),
            _bcast_spec((h1, dout)), _bcast_spec((1, dout)),
            _bcast_spec((1, dout)), _bcast_spec((1, dout)),
        ],
        out_specs=_row_spec(tile, dout),
        compiler_params=_PARALLEL,
        cost_estimate=_cost(2 * n * h1 * (din + dout), (x, *params), (n, dout),
                            _ACT_DTYPE, transcendentals=n),
    )(x, w1, b1, w2, b2, gamma, beta)


def node_net_apply(params, aggr, x):
    w1a, w1b, b1, w2, b2, gamma, beta = params
    n = x.shape[0]
    tile, grid = _row_tiling(n)
    da, h1 = w1a.shape
    dx = w1b.shape[0]
    dout = w2.shape[1]
    return pl.pallas_call(
        _node_net_kernel,
        out_shape=jax.ShapeDtypeStruct((n, dout), _ACT_DTYPE),
        grid=(grid,),
        in_specs=[
            _row_spec(tile, da), _row_spec(tile, dx),
            _bcast_spec((da, h1)), _bcast_spec((dx, h1)), _bcast_spec((1, h1)),
            _bcast_spec((h1, dout)), _bcast_spec((1, dout)),
            _bcast_spec((1, dout)), _bcast_spec((1, dout)),
        ],
        out_specs=_row_spec(tile, dout),
        compiler_params=_PARALLEL,
        cost_estimate=_cost(2 * n * h1 * (da + dx + dout), (aggr, x, *params),
                            (n, dout), _ACT_DTYPE, transcendentals=n),
    )(aggr, x, w1a, w1b, b1, w2, b2, gamma, beta)


def edge_dual_apply(params, x_col, x_row, e):
    """Fused dual edge_net; returns a lane-dense (E, 2H) slab [message | new edge_attr]."""
    w1ab, w1c, b1, w2, b2, gamma, beta = params
    n = e.shape[0]
    tile, grid = _row_tiling(n)
    dn = x_col.shape[1]
    de, h1 = w1c.shape
    dout = w2.shape[1]
    return pl.pallas_call(
        _edge_dual_kernel,
        out_shape=jax.ShapeDtypeStruct((n, 2 * dout), _ACT_DTYPE),
        grid=(grid,),
        in_specs=[
            _row_spec(tile, dn), _row_spec(tile, dn), _row_spec(tile, de),
            _bcast_spec((dn, 2 * h1)), _bcast_spec((de, h1)), _bcast_spec((1, h1)),
            _bcast_spec((h1, dout)), _bcast_spec((1, dout)),
            _bcast_spec((1, dout)), _bcast_spec((1, dout)),
        ],
        out_specs=_row_spec(tile, 2 * dout),
        compiler_params=_PARALLEL,
        cost_estimate=_cost(2 * n * h1 * (4 * dn + de + 2 * dout),
                            (x_col, x_row, e, *params), (n, 2 * dout), _ACT_DTYPE,
                            transcendentals=2 * n),
    )(x_col, x_row, e, w1ab, w1c, b1, w2, b2, gamma, beta)


def mlp_apply(params, x):
    w1, b1, w2, b2 = params
    n = x.shape[0]
    tile, grid = _row_tiling(n)
    din, h1 = w1.shape
    dout = w2.shape[1]
    # TODO(synk): dout=2 (< 128 lanes) still stores via masked vst.msk; output is tiny, left as-is.
    return pl.pallas_call(
        _mlp_kernel,
        out_shape=jax.ShapeDtypeStruct((n, dout), jnp.float32),
        grid=(grid,),
        in_specs=[
            _row_spec(tile, din),
            _bcast_spec((din, h1)), _bcast_spec((1, h1)),
            _bcast_spec((h1, dout)), _bcast_spec((1, dout)),
        ],
        out_specs=_row_spec(tile, dout),
        compiler_params=_PARALLEL,
        cost_estimate=_cost(2 * n * h1 * (din + dout), (x, *params), (n, dout), jnp.float32),
    )(x, w1, b1, w2, b2)


# ---------------------------------------------------------------------------
# Deterministic parameter init (PyTorch Linear-style uniform; LN: gamma=1, beta=0)
# Hot-path weights stored bf16; biases / LN params stored 2-D f32 (no reshapes in kernels).
# ---------------------------------------------------------------------------
def _init_linear(key, fan_in, fan_out):
    k1, k2 = jax.random.split(key)
    bound = 1.0 / float(fan_in) ** 0.5
    w = jax.random.uniform(k1, (fan_in, fan_out), jnp.float32, -bound, bound)
    b = jax.random.uniform(k2, (1, fan_out), jnp.float32, -bound, bound)
    return w, b


def _init_mlp_ln(key, din, hidden, dout):
    k1, k2 = jax.random.split(key)
    w1, b1 = _init_linear(k1, din, hidden)
    w2, b2 = _init_linear(k2, hidden, dout)
    return (w1, b1, w2, b2,
            jnp.ones((1, dout), jnp.float32), jnp.zeros((1, dout), jnp.float32))


def _init_edge_net(key, hidden):
    # edge_net: Linear(3H, H) -> ReLU -> Linear(H, H) -> ReLU -> LN(H).
    # W1 is split per operand and re-packed as W1ab = [W1a | W1b] (H, 2H); W1c kept separate.
    k1, k2 = jax.random.split(key)
    w1, b1 = _init_linear(k1, 3 * hidden, hidden)
    w2, b2 = _init_linear(k2, hidden, hidden)
    w1ab = jnp.concatenate([w1[:hidden], w1[hidden:2 * hidden]], axis=1)
    return (w1ab.astype(_COMPUTE_DTYPE), w1[2 * hidden:].astype(_COMPUTE_DTYPE), b1,
            w2.astype(_COMPUTE_DTYPE), b2,
            jnp.ones((1, hidden), jnp.float32), jnp.zeros((1, hidden), jnp.float32))


def _init_node_net(key, hidden):
    # node_net: Linear(2H, H) -> ReLU -> Linear(H, H) -> ReLU -> LN(H); W1 split per operand.
    k1, k2 = jax.random.split(key)
    w1, b1 = _init_linear(k1, 2 * hidden, hidden)
    w2, b2 = _init_linear(k2, hidden, hidden)
    return (w1[:hidden].astype(_COMPUTE_DTYPE), w1[hidden:].astype(_COMPUTE_DTYPE), b1,
            w2.astype(_COMPUTE_DTYPE), b2,
            jnp.ones((1, hidden), jnp.float32), jnp.zeros((1, hidden), jnp.float32))


def _init_mlp(key, din, hidden, dout):
    k1, k2 = jax.random.split(key)
    w1, b1 = _init_linear(k1, din, hidden)
    w2, b2 = _init_linear(k2, hidden, dout)
    return (w1, b1, w2, b2)


def init_network_mapper(key, node_feat_in, edge_feat_in, node_feat_out, hidden):
    keys = jax.random.split(key, 5)
    return {
        "nodeMLP0": _init_mlp_ln(keys[0], node_feat_in, hidden, hidden),
        "edgeMLP0": _init_mlp_ln(keys[1], edge_feat_in, hidden, hidden),
        "edge_net": _init_edge_net(keys[2], hidden),
        "node_net": _init_node_net(keys[3], hidden),
        "nodeMLPFinal": _init_mlp(keys[4], hidden, hidden, node_feat_out),
    }


# ---------------------------------------------------------------------------
# Forward pass (mirrors MyNetworkMapper.forward / MyMessagePassing semantics)
# ---------------------------------------------------------------------------
def my_network_mapper(params, x, edge_index, edge_attr, *, num_msg_pass):
    x_ = mlp_ln_apply(params["nodeMLP0"], x)          # (N, H) bf16
    e_ = mlp_ln_apply(params["edgeMLP0"], edge_attr)  # (E, H) bf16
    row = edge_index[0]   # source node (j) in PyG default flow
    col = edge_index[1]   # target node (i)
    num_nodes = x.shape[0]
    hidden = x_.shape[1]
    edge_params = params["edge_net"]
    node_params = params["node_net"]

    for _ in range(num_msg_pass):
        # TODO(synk): the gathers and the scatter-add (data-dependent) stay in XLA; for very
        # large graphs a resident-VMEM Pallas segment-sum over target-sorted edges with
        # scalar-prefetched edge_index would remove the remaining (E, H) HBM round trips.
        x_row = x_[row]   # x_j = x[source]
        x_col = x_[col]   # x_i = x[target]
        # One fused pallas_call computes both message(x_i, x_j, e) and the edge update
        # edge_net(cat[x[row], x[col], e]); outputs a lane-dense [msg | e_new] slab.
        dual = edge_dual_apply(edge_params, x_col, x_row, e_)   # (E, 2H)
        msg = dual[:, :hidden]
        e_ = dual[:, hidden:]
        # 'add' aggregation onto target nodes; accumulate in f32 for accuracy.
        aggr = jnp.zeros((num_nodes, hidden), jnp.float32).at[col].add(
            msg.astype(jnp.float32))
        # update(aggr_out, x) -> node_net(cat[aggr_out, x])  (concat fused in-kernel)
        x_ = node_net_apply(node_params, aggr.astype(_ACT_DTYPE), x_)

    return mlp_apply(params["nodeMLPFinal"], x_)      # (N, nodeFeatOut) f32


# ---------------------------------------------------------------------------
if __name__ == "__main__":
    NODE_FEAT_IN = 4
    EDGE_FEAT_IN = 3
    NODE_FEAT_OUT = 2
    HIDDEN = 32
    NUM_MSG_PASS = 2
    N_NODES = 8
    N_EDGES = 16

    root = jax.random.PRNGKey(0)
    k_params, k_x, k_e, k_idx = jax.random.split(root, 4)

    params = init_network_mapper(k_params, NODE_FEAT_IN, EDGE_FEAT_IN,
                                 NODE_FEAT_OUT, HIDDEN)
    x = jax.random.normal(k_x, (N_NODES, NODE_FEAT_IN), jnp.float32)
    edge_attr = jax.random.normal(k_e, (N_EDGES, EDGE_FEAT_IN), jnp.float32)
    edge_index = jax.random.randint(k_idx, (2, N_EDGES), 0, N_NODES, jnp.int32)

    fwd = jax.jit(functools.partial(my_network_mapper, num_msg_pass=NUM_MSG_PASS))
    out = fwd(params, x, edge_index, edge_attr)
    jax.block_until_ready(out)
    assert out.shape == (N_NODES, NODE_FEAT_OUT), out.shape
    assert bool(jnp.all(jnp.isfinite(out)))
    print("KERNEL_OK")
</pallas_src>

<mosaic_0001>
module attributes {stable_mosaic.version = 11 : i64} {
  func.func @_mlp_ln_kernel(%arg0: i32, %arg1: memref<8x4xf32, #tpu.memory_space<vmem>>, %arg2: memref<4x32xf32, #tpu.memory_space<vmem>>, %arg3: memref<1x32xf32, #tpu.memory_space<vmem>>, %arg4: memref<32x32xf32, #tpu.memory_space<vmem>>, %arg5: memref<1x32xf32, #tpu.memory_space<vmem>>, %arg6: memref<1x32xf32, #tpu.memory_space<vmem>>, %arg7: memref<1x32xf32, #tpu.memory_space<vmem>>, %arg8: memref<8x32xbf16, #tpu.memory_space<vmem>>) attributes {dimension_semantics = [#tpu.dimension_semantics<parallel>], iteration_bounds = array<i64: 1>, scalar_prefetch = 0 : i64, scratch_operands = 0 : i64, tpu.core_type = #tpu.core_type<tc>, window_params = [{transform_indices = @transform_0, window_bounds = array<i64: 8, 4>}, {pipeline_mode = #tpu.pipeline_mode<synchronous>, transform_indices = @transform_1, window_bounds = array<i64: 4, 32>}, {pipeline_mode = #tpu.pipeline_mode<synchronous>, transform_indices = @transform_2, window_bounds = array<i64: 1, 32>}, {pipeline_mode = #tpu.pipeline_mode<synchronous>, transform_indices = @transform_3, window_bounds = array<i64: 32, 32>}, {pipeline_mode = #tpu.pipeline_mode<synchronous>, transform_indices = @transform_4, window_bounds = array<i64: 1, 32>}, {pipeline_mode = #tpu.pipeline_mode<synchronous>, transform_indices = @transform_5, window_bounds = array<i64: 1, 32>}, {pipeline_mode = #tpu.pipeline_mode<synchronous>, transform_indices = @transform_6, window_bounds = array<i64: 1, 32>}, {transform_indices = @transform_7, window_bounds = array<i64: 8, 32>}]} {
    %c0 = arith.constant 0 : index
    %c0_0 = arith.constant 0 : index
    %0 = vector.load %arg1[%c0, %c0_0] : memref<8x4xf32, #tpu.memory_space<vmem>>, vector<8x4xf32>
    %c0_1 = arith.constant 0 : index
    %c0_2 = arith.constant 0 : index
    %1 = vector.load %arg2[%c0_1, %c0_2] : memref<4x32xf32, #tpu.memory_space<vmem>>, vector<4x32xf32>
    %cst = arith.constant dense<0.000000e+00> : vector<8x32xf32>
    %2 = tpu.matmul %0, %1, %cst {dimension_numbers = #tpu.dot_dimension_numbers<[1], [0], [0], [1], [0, 0, 1, 1], [], []>} : vector<8x4xf32>, vector<4x32xf32>, vector<8x32xf32> -> vector<8x32xf32>
    %c0_3 = arith.constant 0 : index
    %c0_4 = arith.constant 0 : index
    %3 = vector.load %arg3[%c0_3, %c0_4] : memref<1x32xf32, #tpu.memory_space<vmem>>, vector<1x32xf32>
    %4 = vector.broadcast %3 : vector<1x32xf32> to vector<8x32xf32>
    %5 = arith.addf %2, %4 : vector<8x32xf32>
    %cst_5 = arith.constant 0.000000e+00 : f32
    %6 = vector.broadcast %cst_5 : f32 to vector<8x32xf32>
    %7 = arith.maximumf %5, %6 : vector<8x32xf32>
    %c0_6 = arith.constant 0 : index
    %c0_7 = arith.constant 0 : index
    %8 = vector.load %arg4[%c0_6, %c0_7] : memref<32x32xf32, #tpu.memory_space<vmem>>, vector<32x32xf32>
    %cst_8 = arith.constant dense<0.000000e+00> : vector<8x32xf32>
    %9 = tpu.matmul %7, %8, %cst_8 {dimension_numbers = #tpu.dot_dimension_numbers<[1], [0], [0], [1], [0, 0, 1, 1], [], []>} : vector<8x32xf32>, vector<32x32xf32>, vector<8x32xf32> -> vector<8x32xf32>
    %c0_9 = arith.constant 0 : index
    %c0_10 = arith.constant 0 : index
    %10 = vector.load %arg5[%c0_9, %c0_10] : memref<1x32xf32, #tpu.memory_space<vmem>>, vector<1x32xf32>
    %11 = vector.broadcast %10 : vector<1x32xf32> to vector<8x32xf32>
    %12 = arith.addf %9, %11 : vector<8x32xf32>
    %cst_11 = arith.constant 0.000000e+00 : f32
    %13 = vector.broadcast %cst_11 : f32 to vector<8x32xf32>
    %14 = arith.maximumf %12, %13 : vector<8x32xf32>
    %c0_12 = arith.constant 0 : index
    %c0_13 = arith.constant 0 : index
    %15 = vector.load %arg6[%c0_12, %c0_13] : memref<1x32xf32, #tpu.memory_space<vmem>>, vector<1x32xf32>
    %c0_14 = arith.constant 0 : index
    %c0_15 = arith.constant 0 : index
    %16 = vector.load %arg7[%c0_14, %c0_15] : memref<1x32xf32, #tpu.memory_space<vmem>>, vector<1x32xf32>
    %cst_16 = arith.constant dense<0.000000e+00> : vector<8xf32>
    %17 = vector.multi_reduction <add>, %14, %cst_16 [1] : vector<8x32xf32> to vector<8xf32>
    %18 = vector.shape_cast %17 : vector<8xf32> to vector<8x1xf32>
    %cst_17 = arith.constant 3.200000e+01 : f32
    %19 = vector.broadcast %cst_17 : f32 to vector<8x1xf32>
    %20 = arith.divf %18, %19 : vector<8x1xf32>
    %21 = arith.mulf %14, %14 : vector<8x32xf32>
    %cst_18 = arith.constant dense<0.000000e+00> : vector<8xf32>
    %22 = vector.multi_reduction <add>, %21, %cst_18 [1] : vector<8x32xf32> to vector<8xf32>
    %23 = vector.shape_cast %22 : vector<8xf32> to vector<8x1xf32>
    %cst_19 = arith.constant 3.200000e+01 : f32
    %24 = vector.broadcast %cst_19 : f32 to vector<8x1xf32>
    %25 = arith.divf %23, %24 : vector<8x1xf32>
    %26 = arith.mulf %20, %20 : vector<8x1xf32>
    %27 = arith.subf %25, %26 : vector<8x1xf32>
    %cst_20 = arith.constant 0.000000e+00 : f32
    %28 = vector.broadcast %cst_20 : f32 to vector<8x1xf32>
    %29 = arith.maximumf %27, %28 : vector<8x1xf32>
    %30 = vector.broadcast %20 : vector<8x1xf32> to vector<8x32xf32>
    %31 = arith.subf %14, %30 : vector<8x32xf32>
    %cst_21 = arith.constant 9.99999974E-6 : f32
    %32 = vector.broadcast %cst_21 : f32 to vector<8x1xf32>
    %33 = arith.addf %29, %32 : vector<8x1xf32>
    %34 = math.rsqrt %33 : vector<8x1xf32>
    %35 = vector.broadcast %34 : vector<8x1xf32> to vector<8x32xf32>
    %36 = arith.mulf %31, %35 : vector<8x32xf32>
    %37 = vector.broadcast %15 : vector<1x32xf32> to vector<8x32xf32>
    %38 = arith.mulf %36, %37 : vector<8x32xf32>
    %39 = vector.broadcast %16 : vector<1x32xf32> to vector<8x32xf32>
    %40 = arith.addf %38, %39 : vector<8x32xf32>
    %41 = arith.truncf %40 : vector<8x32xf32> to vector<8x32xbf16>
    %c0_22 = arith.constant 0 : index
    %c0_23 = arith.constant 0 : index
    %42 = vector.load %arg8[%c0_22, %c0_23] : memref<8x32xbf16, #tpu.memory_space<vmem>>, vector<8x32xbf16>
    tpu.vector_store %arg8[%c0_22, %c0_23], %41 {strides = array<i32>} : memref<8x32xbf16, #tpu.memory_space<vmem>>, vector<8x32xbf16>,
    return
  }
  func.func @transform_0(%arg0: i32) -> (i32, i32) {
    %c0_i32 = arith.constant 0 : i32
    %c0_i32_0 = arith.constant 0 : i32
    return %arg0, %c0_i32 : i32, i32
  }
  func.func @transform_1(%arg0: i32) -> (i32, i32) {
    %c0_i32 = arith.constant 0 : i32
    %c0_i32_0 = arith.constant 0 : i32
    %c0_i32_1 = arith.constant 0 : i32
    return %c0_i32, %c0_i32_0 : i32, i32
  }
  func.func @transform_2(%arg0: i32) -> (i32, i32) {
    %c0_i32 = arith.constant 0 : i32
    %c0_i32_0 = arith.constant 0 : i32
    %c0_i32_1 = arith.constant 0 : i32
    return %c0_i32, %c0_i32_0 : i32, i32
  }
  func.func @transform_3(%arg0: i32) -> (i32, i32) {
    %c0_i32 = arith.constant 0 : i32
    %c0_i32_0 = arith.constant 0 : i32
    %c0_i32_1 = arith.constant 0 : i32
    return %c0_i32, %c0_i32_0 : i32, i32
  }
  func.func @transform_4(%arg0: i32) -> (i32, i32) {
    %c0_i32 = arith.constant 0 : i32
    %c0_i32_0 = arith.constant 0 : i32
    %c0_i32_1 = arith.constant 0 : i32
    return %c0_i32, %c0_i32_0 : i32, i32
  }
  func.func @transform_5(%arg0: i32) -> (i32, i32) {
    %c0_i32 = arith.constant 0 : i32
    %c0_i32_0 = arith.constant 0 : i32
    %c0_i32_1 = arith.constant 0 : i32
    return %c0_i32, %c0_i32_0 : i32, i32
  }
  func.func @transform_6(%arg0: i32) -> (i32, i32) {
    %c0_i32 = arith.constant 0 : i32
    %c0_i32_0 = arith.constant 0 : i32
    %c0_i32_1 = arith.constant 0 : i32
    return %c0_i32, %c0_i32_0 : i32, i32
  }
  func.func @transform_7(%arg0: i32) -> (i32, i32) {
    %c0_i32 = arith.constant 0 : i32
    %c0_i32_0 = arith.constant 0 : i32
    return %arg0, %c0_i32 : i32, i32
  }
}

module attributes {stable_mosaic.version = 11 : i64} {
  func.func @_mlp_ln_kernel(%arg0: i32, %arg1: memref<8x3xf32, #tpu.memory_space<vmem>>, %arg2: memref<3x32xf32, #tpu.memory_space<vmem>>, %arg3: memref<1x32xf32, #tpu.memory_space<vmem>>, %arg4: memref<32x32xf32, #tpu.memory_space<vmem>>, %arg5: memref<1x32xf32, #tpu.memory_space<vmem>>, %arg6: memref<1x32xf32, #tpu.memory_space<vmem>>, %arg7: memref<1x32xf32, #tpu.memory_space<vmem>>, %arg8: memref<8x32xbf16, #tpu.memory_space<vmem>>) attributes {dimension_semantics = [#tpu.dimension_semantics<parallel>], iteration_bounds = array<i64: 2>, scalar_prefetch = 0 : i64, scratch_operands = 0 : i64, tpu.core_type = #tpu.core_type<tc>, window_params = [{transform_indices = @transform_0, window_bounds = array<i64: 8, 3>}, {pipeline_mode = #tpu.pipeline_mode<synchronous>, transform_indices = @transform_1, window_bounds = array<i64: 3, 32>}, {pipeline_mode = #tpu.pipeline_mode<synchronous>, transform_indices = @transform_2, window_bounds = array<i64: 1, 32>}, {pipeline_mode = #tpu.pipeline_mode<synchronous>, transform_indices = @transform_3, window_bounds = array<i64: 32, 32>}, {pipeline_mode = #tpu.pipeline_mode<synchronous>, transform_indices = @transform_4, window_bounds = array<i64: 1, 32>}, {pipeline_mode = #tpu.pipeline_mode<synchronous>, transform_indices = @transform_5, window_bounds = array<i64: 1, 32>}, {pipeline_mode = #tpu.pipeline_mode<synchronous>, transform_indices = @transform_6, window_bounds = array<i64: 1, 32>}, {transform_indices = @transform_7, window_bounds = array<i64: 8, 32>}]} {
    %c0 = arith.constant 0 : index
    %c0_0 = arith.constant 0 : index
    %0 = vector.load %arg1[%c0, %c0_0] : memref<8x3xf32, #tpu.memory_space<vmem>>, vector<8x3xf32>
    %c0_1 = arith.constant 0 : index
    %c0_2 = arith.constant 0 : index
    %1 = vector.load %arg2[%c0_1, %c0_2] : memref<3x32xf32, #tpu.memory_space<vmem>>, vector<3x32xf32>
    %cst = arith.constant dense<0.000000e+00> : vector<8x32xf32>
    %2 = tpu.matmul %0, %1, %cst {dimension_numbers = #tpu.dot_dimension_numbers<[1], [0], [0], [1], [0, 0, 1, 1], [], []>} : vector<8x3xf32>, vector<3x32xf32>, vector<8x32xf32> -> vector<8x32xf32>
    %c0_3 = arith.constant 0 : index
    %c0_4 = arith.constant 0 : index
    %3 = vector.load %arg3[%c0_3, %c0_4] : memref<1x32xf32, #tpu.memory_space<vmem>>, vector<1x32xf32>
    %4 = vector.broadcast %3 : vector<1x32xf32> to vector<8x32xf32>
    %5 = arith.addf %2, %4 : vector<8x32xf32>
    %cst_5 = arith.constant 0.000000e+00 : f32
    %6 = vector.broadcast %cst_5 : f32 to vector<8x32xf32>
    %7 = arith.maximumf %5, %6 : vector<8x32xf32>
    %c0_6 = arith.constant 0 : index
    %c0_7 = arith.constant 0 : index
    %8 = vector.load %arg4[%c0_6, %c0_7] : memref<32x32xf32, #tpu.memory_space<vmem>>, vector<32x32xf32>
    %cst_8 = arith.constant dense<0.000000e+00> : vector<8x32xf32>
    %9 = tpu.matmul %7, %8, %cst_8 {dimension_numbers = #tpu.dot_dimension_numbers<[1], [0], [0], [1], [0, 0, 1, 1], [], []>} : vector<8x32xf32>, vector<32x32xf32>, vector<8x32xf32> -> vector<8x32xf32>
    %c0_9 = arith.constant 0 : index
    %c0_10 = arith.constant 0 : index
    %10 = vector.load %arg5[%c0_9, %c0_10] : memref<1x32xf32, #tpu.memory_space<vmem>>, vector<1x32xf32>
    %11 = vector.broadcast %10 : vector<1x32xf32> to vector<8x32xf32>
    %12 = arith.addf %9, %11 : vector<8x32xf32>
    %cst_11 = arith.constant 0.000000e+00 : f32
    %13 = vector.broadcast %cst_11 : f32 to vector<8x32xf32>
    %14 = arith.maximumf %12, %13 : vector<8x32xf32>
    %c0_12 = arith.constant 0 : index
    %c0_13 = arith.constant 0 : index
    %15 = vector.load %arg6[%c0_12, %c0_13] : memref<1x32xf32, #tpu.memory_space<vmem>>, vector<1x32xf32>
    %c0_14 = arith.constant 0 : index
    %c0_15 = arith.constant 0 : index
    %16 = vector.load %arg7[%c0_14, %c0_15] : memref<1x32xf32, #tpu.memory_space<vmem>>, vector<1x32xf32>
    %cst_16 = arith.constant dense<0.000000e+00> : vector<8xf32>
    %17 = vector.multi_reduction <add>, %14, %cst_16 [1] : vector<8x32xf32> to vector<8xf32>
    %18 = vector.shape_cast %17 : vector<8xf32> to vector<8x1xf32>
    %cst_17 = arith.constant 3.200000e+01 : f32
    %19 = vector.broadcast %cst_17 : f32 to vector<8x1xf32>
    %20 = arith.divf %18, %19 : vector<8x1xf32>
    %21 = arith.mulf %14, %14 : vector<8x32xf32>
    %cst_18 = arith.constant dense<0.000000e+00> : vector<8xf32>
    %22 = vector.multi_reduction <add>, %21, %cst_18 [1] : vector<8x32xf32> to vector<8xf32>
    %23 = vector.shape_cast %22 : vector<8xf32> to vector<8x1xf32>
    %cst_19 = arith.constant 3.200000e+01 : f32
    %24 = vector.broadcast %cst_19 : f32 to vector<8x1xf32>
    %25 = arith.divf %23, %24 : vector<8x1xf32>
    %26 = arith.mulf %20, %20 : vector<8x1xf32>
    %27 = arith.subf %25, %26 : vector<8x1xf32>
    %cst_20 = arith.constant 0.000000e+00 : f32
    %28 = vector.broadcast %cst_20 : f32 to vector<8x1xf32>
    %29 = arith.maximumf %27, %28 : vector<8x1xf32>
    %30 = vector.broadcast %20 : vector<8x1xf32> to vector<8x32xf32>
    %31 = arith.subf %14, %30 : vector<8x32xf32>
    %cst_21 = arith.constant 9.99999974E-6 : f32
    %32 = vector.broadcast %cst_21 : f32 to vector<8x1xf32>
    %33 = arith.addf %29, %32 : vector<8x1xf32>
    %34 = math.rsqrt %33 : vector<8x1xf32>
    %35 = vector.broadcast %34 : vector<8x1xf32> to vector<8x32xf32>
    %36 = arith.mulf %31, %35 : vector<8x32xf32>
    %37 = vector.broadcast %15 : vector<1x32xf32> to vector<8x32xf32>
    %38 = arith.mulf %36, %37 : vector<8x32xf32>
    %39 = vector.broadcast %16 : vector<1x32xf32> to vector<8x32xf32>
    %40 = arith.addf %38, %39 : vector<8x32xf32>
    %41 = arith.truncf %40 : vector<8x32xf32> to vector<8x32xbf16>
    %c0_22 = arith.constant 0 : index
    %c0_23 = arith.constant 0 : index
    %42 = vector.load %arg8[%c0_22, %c0_23] : memref<8x32xbf16, #tpu.memory_space<vmem>>, vector<8x32xbf16>
    tpu.vector_store %arg8[%c0_22, %c0_23], %41 {strides = array<i32>} : memref<8x32xbf16, #tpu.memory_space<vmem>>, vector<8x32xbf16>,
    return
  }
  func.func @transform_0(%arg0: i32) -> (i32, i32) {
    %c0_i32 = arith.constant 0 : i32
    %c0_i32_0 = arith.constant 0 : i32
    return %arg0, %c0_i32 : i32, i32
  }
  func.func @transform_1(%arg0: i32) -> (i32, i32) {
    %c0_i32 = arith.constant 0 : i32
    %c0_i32_0 = arith.constant 0 : i32
    %c0_i32_1 = arith.constant 0 : i32
    return %c0_i32, %c0_i32_0 : i32, i32
  }
  func.func @transform_2(%arg0: i32) -> (i32, i32) {
    %c0_i32 = arith.constant 0 : i32
    %c0_i32_0 = arith.constant 0 : i32
    %c0_i32_1 = arith.constant 0 : i32
    return %c0_i32, %c0_i32_0 : i32, i32
  }
  func.func @transform_3(%arg0: i32) -> (i32, i32) {
    %c0_i32 = arith.constant 0 : i32
    %c0_i32_0 = arith.constant 0 : i32
    %c0_i32_1 = arith.constant 0 : i32
    return %c0_i32, %c0_i32_0 : i32, i32
  }
  func.func @transform_4(%arg0: i32) -> (i32, i32) {
    %c0_i32 = arith.constant 0 : i32
    %c0_i32_0 = arith.constant 0 : i32
    %c0_i32_1 = arith.constant 0 : i32
    return %c0_i32, %c0_i32_0 : i32, i32
  }
  func.func @transform_5(%arg0: i32) -> (i32, i32) {
    %c0_i32 = arith.constant 0 : i32
    %c0_i32_0 = arith.constant 0 : i32
    %c0_i32_1 = arith.constant 0 : i32
    return %c0_i32, %c0_i32_0 : i32, i32
  }
  func.func @transform_6(%arg0: i32) -> (i32, i32) {
    %c0_i32 = arith.constant 0 : i32
    %c0_i32_0 = arith.constant 0 : i32
    %c0_i32_1 = arith.constant 0 : i32
    return %c0_i32, %c0_i32_0 : i32, i32
  }
  func.func @transform_7(%arg0: i32) -> (i32, i32) {
    %c0_i32 = arith.constant 0 : i32
    %c0_i32_0 = arith.constant 0 : i32
    return %arg0, %c0_i32 : i32, i32
  }
}

module attributes {stable_mosaic.version = 11 : i64} {
  func.func @_edge_dual_kernel(%arg0: i32, %arg1: memref<8x32xbf16, #tpu.memory_space<vmem>>, %arg2: memref<8x32xbf16, #tpu.memory_space<vmem>>, %arg3: memref<8x32xbf16, #tpu.memory_space<vmem>>, %arg4: memref<32x64xbf16, #tpu.memory_space<vmem>>, %arg5: memref<32x32xbf16, #tpu.memory_space<vmem>>, %arg6: memref<1x32xf32, #tpu.memory_space<vmem>>, %arg7: memref<32x32xbf16, #tpu.memory_space<vmem>>, %arg8: memref<1x32xf32, #tpu.memory_space<vmem>>, %arg9: memref<1x32xf32, #tpu.memory_space<vmem>>, %arg10: memref<1x32xf32, #tpu.memory_space<vmem>>, %arg11: memref<8x64xbf16, #tpu.memory_space<vmem>>) attributes {dimension_semantics = [#tpu.dimension_semantics<parallel>], iteration_bounds = array<i64: 2>, scalar_prefetch = 0 : i64, scratch_operands = 0 : i64, tpu.core_type = #tpu.core_type<tc>, window_params = [{transform_indices = @transform_0, window_bounds = array<i64: 8, 32>}, {transform_indices = @transform_1, window_bounds = array<i64: 8, 32>}, {transform_indices = @transform_2, window_bounds = array<i64: 8, 32>}, {pipeline_mode = #tpu.pipeline_mode<synchronous>, transform_indices = @transform_3, window_bounds = array<i64: 32, 64>}, {pipeline_mode = #tpu.pipeline_mode<synchronous>, transform_indices = @transform_4, window_bounds = array<i64: 32, 32>}, {pipeline_mode = #tpu.pipeline_mode<synchronous>, transform_indices = @transform_5, window_bounds = array<i64: 1, 32>}, {pipeline_mode = #tpu.pipeline_mode<synchronous>, transform_indices = @transform_6, window_bounds = array<i64: 32, 32>}, {pipeline_mode = #tpu.pipeline_mode<synchronous>, transform_indices = @transform_7, window_bounds = array<i64: 1, 32>}, {pipeline_mode = #tpu.pipeline_mode<synchronous>, transform_indices = @transform_8, window_bounds = array<i64: 1, 32>}, {pipeline_mode = #tpu.pipeline_mode<synchronous>, transform_indices = @transform_9, window_bounds = array<i64: 1, 32>}, {transform_indices = @transform_10, window_bounds = array<i64: 8, 64>}]} {
    %c0 = arith.constant 0 : index
    %c0_0 = arith.constant 0 : index
    %0 = vector.load %arg1[%c0, %c0_0] : memref<8x32xbf16, #tpu.memory_space<vmem>>, vector<8x32xbf16>
    %c0_1 = arith.constant 0 : index
    %c0_2 = arith.constant 0 : index
    %1 = vector.load %arg2[%c0_1, %c0_2] : memref<8x32xbf16, #tpu.memory_space<vmem>>, vector<8x32xbf16>
    %2 = tpu.concatenate %0, %1 in 0 : vector<8x32xbf16>, vector<8x32xbf16> -> vector<16x32xbf16>
    %c0_3 = arith.constant 0 : index
    %c0_4 = arith.constant 0 : index
    %3 = vector.load %arg4[%c0_3, %c0_4] : memref<32x64xbf16, #tpu.memory_space<vmem>>, vector<32x64xbf16>
    %cst = arith.constant dense<0.000000e+00> : vector<16x64xf32>
    %4 = tpu.matmul %2, %3, %cst {dimension_numbers = #tpu.dot_dimension_numbers<[1], [0], [0], [1], [0, 0, 1, 1], [], []>} : vector<16x32xbf16>, vector<32x64xbf16>, vector<16x64xf32> -> vector<16x64xf32>
    %c0_5 = arith.constant 0 : index
    %c0_6 = arith.constant 0 : index
    %5 = vector.load %arg3[%c0_5, %c0_6] : memref<8x32xbf16, #tpu.memory_space<vmem>>, vector<8x32xbf16>
    %c0_7 = arith.constant 0 : index
    %c0_8 = arith.constant 0 : index
    %6 = vector.load %arg5[%c0_7, %c0_8] : memref<32x32xbf16, #tpu.memory_space<vmem>>, vector<32x32xbf16>
    %cst_9 = arith.constant dense<0.000000e+00> : vector<8x32xf32>
    %7 = tpu.matmul %5, %6, %cst_9 {dimension_numbers = #tpu.dot_dimension_numbers<[1], [0], [0], [1], [0, 0, 1, 1], [], []>} : vector<8x32xbf16>, vector<32x32xbf16>, vector<8x32xf32> -> vector<8x32xf32>
    %c0_10 = arith.constant 0 : index
    %c0_11 = arith.constant 0 : index
    %8 = vector.load %arg6[%c0_10, %c0_11] : memref<1x32xf32, #tpu.memory_space<vmem>>, vector<1x32xf32>
    %9 = vector.broadcast %8 : vector<1x32xf32> to vector<8x32xf32>
    %10 = arith.addf %7, %9 : vector<8x32xf32>
    %11 = vector.extract_strided_slice %4 {offsets = [0, 0], sizes = [8, 32], strides = [1, 1]} : vector<16x64xf32> to vector<8x32xf32>
    %12 = vector.extract_strided_slice %4 {offsets = [0, 32], sizes = [8, 32], strides = [1, 1]} : vector<16x64xf32> to vector<8x32xf32>
    %13 = vector.extract_strided_slice %4 {offsets = [8, 0], sizes = [8, 32], strides = [1, 1]} : vector<16x64xf32> to vector<8x32xf32>
    %14 = vector.extract_strided_slice %4 {offsets = [8, 32], sizes = [8, 32], strides = [1, 1]} : vector<16x64xf32> to vector<8x32xf32>
    %15 = arith.addf %11, %14 : vector<8x32xf32>
    %16 = arith.addf %15, %10 : vector<8x32xf32>
    %17 = arith.addf %13, %12 : vector<8x32xf32>
    %18 = arith.addf %17, %10 : vector<8x32xf32>
    %19 = tpu.concatenate %16, %18 in 0 : vector<8x32xf32>, vector<8x32xf32> -> vector<16x32xf32>
    %cst_12 = arith.constant 0.000000e+00 : f32
    %20 = vector.broadcast %cst_12 : f32 to vector<16x32xf32>
    %21 = arith.maximumf %19, %20 : vector<16x32xf32>
    %22 = arith.truncf %21 : vector<16x32xf32> to vector<16x32xbf16>
    %c0_13 = arith.constant 0 : index
    %c0_14 = arith.constant 0 : index
    %23 = vector.load %arg7[%c0_13, %c0_14] : memref<32x32xbf16, #tpu.memory_space<vmem>>, vector<32x32xbf16>
    %cst_15 = arith.constant dense<0.000000e+00> : vector<16x32xf32>
    %24 = tpu.matmul %22, %23, %cst_15 {dimension_numbers = #tpu.dot_dimension_numbers<[1], [0], [0], [1], [0, 0, 1, 1], [], []>} : vector<16x32xbf16>, vector<32x32xbf16>, vector<16x32xf32> -> vector<16x32xf32>
    %c0_16 = arith.constant 0 : index
    %c0_17 = arith.constant 0 : index
    %25 = vector.load %arg8[%c0_16, %c0_17] : memref<1x32xf32, #tpu.memory_space<vmem>>, vector<1x32xf32>
    %26 = vector.broadcast %25 : vector<1x32xf32> to vector<16x32xf32>
    %27 = arith.addf %24, %26 : vector<16x32xf32>
    %cst_18 = arith.constant 0.000000e+00 : f32
    %28 = vector.broadcast %cst_18 : f32 to vector<16x32xf32>
    %29 = arith.maximumf %27, %28 : vector<16x32xf32>
    %c0_19 = arith.constant 0 : index
    %c0_20 = arith.constant 0 : index
    %30 = vector.load %arg9[%c0_19, %c0_20] : memref<1x32xf32, #tpu.memory_space<vmem>>, vector<1x32xf32>
    %c0_21 = arith.constant 0 : index
    %c0_22 = arith.constant 0 : index
    %31 = vector.load %arg10[%c0_21, %c0_22] : memref<1x32xf32, #tpu.memory_space<vmem>>, vector<1x32xf32>
    %cst_23 = arith.constant dense<0.000000e+00> : vector<16xf32>
    %32 = vector.multi_reduction <add>, %29, %cst_23 [1] : vector<16x32xf32> to vector<16xf32>
    %33 = vector.shape_cast %32 : vector<16xf32> to vector<16x1xf32>
    %cst_24 = arith.constant 3.200000e+01 : f32
    %34 = vector.broadcast %cst_24 : f32 to vector<16x1xf32>
    %35 = arith.divf %33, %34 : vector<16x1xf32>
    %36 = arith.mulf %29, %29 : vector<16x32xf32>
    %cst_25 = arith.constant dense<0.000000e+00> : vector<16xf32>
    %37 = vector.multi_reduction <add>, %36, %cst_25 [1] : vector<16x32xf32> to vector<16xf32>
    %38 = vector.shape_cast %37 : vector<16xf32> to vector<16x1xf32>
    %cst_26 = arith.constant 3.200000e+01 : f32
    %39 = vector.broadcast %cst_26 : f32 to vector<16x1xf32>
    %40 = arith.divf %38, %39 : vector<16x1xf32>
    %41 = arith.mulf %35, %35 : vector<16x1xf32>
    %42 = arith.subf %40, %41 : vector<16x1xf32>
    %cst_27 = arith.constant 0.000000e+00 : f32
    %43 = vector.broadcast %cst_27 : f32 to vector<16x1xf32>
    %44 = arith.maximumf %42, %43 : vector<16x1xf32>
    %45 = vector.broadcast %35 : vector<16x1xf32> to vector<16x32xf32>
    %46 = arith.subf %29, %45 : vector<16x32xf32>
    %cst_28 = arith.constant 9.99999974E-6 : f32
    %47 = vector.broadcast %cst_28 : f32 to vector<16x1xf32>
    %48 = arith.addf %44, %47 : vector<16x1xf32>
    %49 = math.rsqrt %48 : vector<16x1xf32>
    %50 = vector.broadcast %49 : vector<16x1xf32> to vector<16x32xf32>
    %51 = arith.mulf %46, %50 : vector<16x32xf32>
    %52 = vector.broadcast %30 : vector<1x32xf32> to vector<16x32xf32>
    %53 = arith.mulf %51, %52 : vector<16x32xf32>
    %54 = vector.broadcast %31 : vector<1x32xf32> to vector<16x32xf32>
    %55 = arith.addf %53, %54 : vector<16x32xf32>
    %56 = vector.extract_strided_slice %55 {offsets = [0, 0], sizes = [8, 32], strides = [1, 1]} : vector<16x32xf32> to vector<8x32xf32>
    %57 = vector.extract_strided_slice %55 {offsets = [8, 0], sizes = [8, 32], strides = [1, 1]} : vector<16x32xf32> to vector<8x32xf32>
    %58 = tpu.concatenate %56, %57 in 1 : vector<8x32xf32>, vector<8x32xf32> -> vector<8x64xf32>
    %59 = arith.truncf %58 : vector<8x64xf32> to vector<8x64xbf16>
    %c0_29 = arith.constant 0 : index
    %c0_30 = arith.constant 0 : index
    %60 = vector.load %arg11[%c0_29, %c0_30] : memref<8x64xbf16, #tpu.memory_space<vmem>>, vector<8x64xbf16>
    tpu.vector_store %arg11[%c0_29, %c0_30], %59 {strides = array<i32>} : memref<8x64xbf16, #tpu.memory_space<vmem>>, vector<8x64xbf16>,
    return
  }
  func.func @transform_0(%arg0: i32) -> (i32, i32) {
    %c0_i32 = arith.constant 0 : i32
    %c0_i32_0 = arith.constant 0 : i32
    return %arg0, %c0_i32 : i32, i32
  }
  func.func @transform_1(%arg0: i32) -> (i32, i32) {
    %c0_i32 = arith.constant 0 : i32
    %c0_i32_0 = arith.constant 0 : i32
    return %arg0, %c0_i32 : i32, i32
  }
  func.func @transform_2(%arg0: i32) -> (i32, i32) {
    %c0_i32 = arith.constant 0 : i32
    %c0_i32_0 = arith.constant 0 : i32
    return %arg0, %c0_i32 : i32, i32
  }
  func.func @transform_3(%arg0: i32) -> (i32, i32) {
    %c0_i32 = arith.constant 0 : i32
    %c0_i32_0 = arith.constant 0 : i32
    %c0_i32_1 = arith.constant 0 : i32
    return %c0_i32, %c0_i32_0 : i32, i32
  }
  func.func @transform_4(%arg0: i32) -> (i32, i32) {
    %c0_i32 = arith.constant 0 : i32
    %c0_i32_0 = arith.constant 0 : i32
    %c0_i32_1 = arith.constant 0 : i32
    return %c0_i32, %c0_i32_0 : i32, i32
  }
  func.func @transform_5(%arg0: i32) -> (i32, i32) {
    %c0_i32 = arith.constant 0 : i32
    %c0_i32_0 = arith.constant 0 : i32
    %c0_i32_1 = arith.constant 0 : i32
    return %c0_i32, %c0_i32_0 : i32, i32
  }
  func.func @transform_6(%arg0: i32) -> (i32, i32) {
    %c0_i32 = arith.constant 0 : i32
    %c0_i32_0 = arith.constant 0 : i32
    %c0_i32_1 = arith.constant 0 : i32
    return %c0_i32, %c0_i32_0 : i32, i32
  }
  func.func @transform_7(%arg0: i32) -> (i32, i32) {
    %c0_i32 = arith.constant 0 : i32
    %c0_i32_0 = arith.constant 0 : i32
    %c0_i32_1 = arith.constant 0 : i32
    return %c0_i32, %c0_i32_0 : i32, i32
  }
  func.func @transform_8(%arg0: i32) -> (i32, i32) {
    %c0_i32 = arith.constant 0 : i32
    %c0_i32_0 = arith.constant 0 : i32
    %c0_i32_1 = arith.constant 0 : i32
    return %c0_i32, %c0_i32_0 : i32, i32
  }
  func.func @transform_9(%arg0: i32) -> (i32, i32) {
    %c0_i32 = arith.constant 0 : i32
    %c0_i32_0 = arith.constant 0 : i32
    %c0_i32_1 = arith.constant 0 : i32
    return %c0_i32, %c0_i32_0 : i32, i32
  }
  func.func @transform_10(%arg0: i32) -> (i32, i32) {
    %c0_i32 = arith.constant 0 : i32
    %c0_i32_0 = arith.constant 0 : i32
    return %arg0, %c0_i32 : i32, i32
  }
}

module attributes {stable_mosaic.version = 11 : i64} {
  func.func @_node_net_kernel(%arg0: i32, %arg1: memref<8x32xbf16, #tpu.memory_space<vmem>>, %arg2: memref<8x32xbf16, #tpu.memory_space<vmem>>, %arg3: memref<32x32xbf16, #tpu.memory_space<vmem>>, %arg4: memref<32x32xbf16, #tpu.memory_space<vmem>>, %arg5: memref<1x32xf32, #tpu.memory_space<vmem>>, %arg6: memref<32x32xbf16, #tpu.memory_space<vmem>>, %arg7: memref<1x32xf32, #tpu.memory_space<vmem>>, %arg8: memref<1x32xf32, #tpu.memory_space<vmem>>, %arg9: memref<1x32xf32, #tpu.memory_space<vmem>>, %arg10: memref<8x32xbf16, #tpu.memory_space<vmem>>) attributes {dimension_semantics = [#tpu.dimension_semantics<parallel>], iteration_bounds = array<i64: 1>, scalar_prefetch = 0 : i64, scratch_operands = 0 : i64, tpu.core_type = #tpu.core_type<tc>, window_params = [{transform_indices = @transform_0, window_bounds = array<i64: 8, 32>}, {transform_indices = @transform_1, window_bounds = array<i64: 8, 32>}, {pipeline_mode = #tpu.pipeline_mode<synchronous>, transform_indices = @transform_2, window_bounds = array<i64: 32, 32>}, {pipeline_mode = #tpu.pipeline_mode<synchronous>, transform_indices = @transform_3, window_bounds = array<i64: 32, 32>}, {pipeline_mode = #tpu.pipeline_mode<synchronous>, transform_indices = @transform_4, window_bounds = array<i64: 1, 32>}, {pipeline_mode = #tpu.pipeline_mode<synchronous>, transform_indices = @transform_5, window_bounds = array<i64: 32, 32>}, {pipeline_mode = #tpu.pipeline_mode<synchronous>, transform_indices = @transform_6, window_bounds = array<i64: 1, 32>}, {pipeline_mode = #tpu.pipeline_mode<synchronous>, transform_indices = @transform_7, window_bounds = array<i64: 1, 32>}, {pipeline_mode = #tpu.pipeline_mode<synchronous>, transform_indices = @transform_8, window_bounds = array<i64: 1, 32>}, {transform_indices = @transform_9, window_bounds = array<i64: 8, 32>}]} {
    %c0 = arith.constant 0 : index
    %c0_0 = arith.constant 0 : index
    %0 = vector.load %arg1[%c0, %c0_0] : memref<8x32xbf16, #tpu.memory_space<vmem>>, vector<8x32xbf16>
    %c0_1 = arith.constant 0 : index
    %c0_2 = arith.constant 0 : index
    %1 = vector.load %arg3[%c0_1, %c0_2] : memref<32x32xbf16, #tpu.memory_space<vmem>>, vector<32x32xbf16>
    %cst = arith.constant dense<0.000000e+00> : vector<8x32xf32>
    %2 = tpu.matmul %0, %1, %cst {dimension_numbers = #tpu.dot_dimension_numbers<[1], [0], [0], [1], [0, 0, 1, 1], [], []>} : vector<8x32xbf16>, vector<32x32xbf16>, vector<8x32xf32> -> vector<8x32xf32>
    %c0_3 = arith.constant 0 : index
    %c0_4 = arith.constant 0 : index
    %3 = vector.load %arg2[%c0_3, %c0_4] : memref<8x32xbf16, #tpu.memory_space<vmem>>, vector<8x32xbf16>
    %c0_5 = arith.constant 0 : index
    %c0_6 = arith.constant 0 : index
    %4 = vector.load %arg4[%c0_5, %c0_6] : memref<32x32xbf16, #tpu.memory_space<vmem>>, vector<32x32xbf16>
    %cst_7 = arith.constant dense<0.000000e+00> : vector<8x32xf32>
    %5 = tpu.matmul %3, %4, %cst_7 {dimension_numbers = #tpu.dot_dimension_numbers<[1], [0], [0], [1], [0, 0, 1, 1], [], []>} : vector<8x32xbf16>, vector<32x32xbf16>, vector<8x32xf32> -> vector<8x32xf32>
    %6 = arith.addf %2, %5 : vector<8x32xf32>
    %c0_8 = arith.constant 0 : index
    %c0_9 = arith.constant 0 : index
    %7 = vector.load %arg5[%c0_8, %c0_9] : memref<1x32xf32, #tpu.memory_space<vmem>>, vector<1x32xf32>
    %8 = vector.broadcast %7 : vector<1x32xf32> to vector<8x32xf32>
    %9 = arith.addf %6, %8 : vector<8x32xf32>
    %cst_10 = arith.constant 0.000000e+00 : f32
    %10 = vector.broadcast %cst_10 : f32 to vector<8x32xf32>
    %11 = arith.maximumf %9, %10 : vector<8x32xf32>
    %12 = arith.truncf %11 : vector<8x32xf32> to vector<8x32xbf16>
    %c0_11 = arith.constant 0 : index
    %c0_12 = arith.constant 0 : index
    %13 = vector.load %arg6[%c0_11, %c0_12] : memref<32x32xbf16, #tpu.memory_space<vmem>>, vector<32x32xbf16>
    %cst_13 = arith.constant dense<0.000000e+00> : vector<8x32xf32>
    %14 = tpu.matmul %12, %13, %cst_13 {dimension_numbers = #tpu.dot_dimension_numbers<[1], [0], [0], [1], [0, 0, 1, 1], [], []>} : vector<8x32xbf16>, vector<32x32xbf16>, vector<8x32xf32> -> vector<8x32xf32>
    %c0_14 = arith.constant 0 : index
    %c0_15 = arith.constant 0 : index
    %15 = vector.load %arg7[%c0_14, %c0_15] : memref<1x32xf32, #tpu.memory_space<vmem>>, vector<1x32xf32>
    %16 = vector.broadcast %15 : vector<1x32xf32> to vector<8x32xf32>
    %17 = arith.addf %14, %16 : vector<8x32xf32>
    %cst_16 = arith.constant 0.000000e+00 : f32
    %18 = vector.broadcast %cst_16 : f32 to vector<8x32xf32>
    %19 = arith.maximumf %17, %18 : vector<8x32xf32>
    %c0_17 = arith.constant 0 : index
    %c0_18 = arith.constant 0 : index
    %20 = vector.load %arg8[%c0_17, %c0_18] : memref<1x32xf32, #tpu.memory_space<vmem>>, vector<1x32xf32>
    %c0_19 = arith.constant 0 : index
    %c0_20 = arith.constant 0 : index
    %21 = vector.load %arg9[%c0_19, %c0_20] : memref<1x32xf32, #tpu.memory_space<vmem>>, vector<1x32xf32>
    %cst_21 = arith.constant dense<0.000000e+00> : vector<8xf32>
    %22 = vector.multi_reduction <add>, %19, %cst_21 [1] : vector<8x32xf32> to vector<8xf32>
    %23 = vector.shape_cast %22 : vector<8xf32> to vector<8x1xf32>
    %cst_22 = arith.constant 3.200000e+01 : f32
    %24 = vector.broadcast %cst_22 : f32 to vector<8x1xf32>
    %25 = arith.divf %23, %24 : vector<8x1xf32>
    %26 = arith.mulf %19, %19 : vector<8x32xf32>
    %cst_23 = arith.constant dense<0.000000e+00> : vector<8xf32>
    %27 = vector.multi_reduction <add>, %26, %cst_23 [1] : vector<8x32xf32> to vector<8xf32>
    %28 = vector.shape_cast %27 : vector<8xf32> to vector<8x1xf32>
    %cst_24 = arith.constant 3.200000e+01 : f32
    %29 = vector.broadcast %cst_24 : f32 to vector<8x1xf32>
    %30 = arith.divf %28, %29 : vector<8x1xf32>
    %31 = arith.mulf %25, %25 : vector<8x1xf32>
    %32 = arith.subf %30, %31 : vector<8x1xf32>
    %cst_25 = arith.constant 0.000000e+00 : f32
    %33 = vector.broadcast %cst_25 : f32 to vector<8x1xf32>
    %34 = arith.maximumf %32, %33 : vector<8x1xf32>
    %35 = vector.broadcast %25 : vector<8x1xf32> to vector<8x32xf32>
    %36 = arith.subf %19, %35 : vector<8x32xf32>
    %cst_26 = arith.constant 9.99999974E-6 : f32
    %37 = vector.broadcast %cst_26 : f32 to vector<8x1xf32>
    %38 = arith.addf %34, %37 : vector<8x1xf32>
    %39 = math.rsqrt %38 : vector<8x1xf32>
    %40 = vector.broadcast %39 : vector<8x1xf32> to vector<8x32xf32>
    %41 = arith.mulf %36, %40 : vector<8x32xf32>
    %42 = vector.broadcast %20 : vector<1x32xf32> to vector<8x32xf32>
    %43 = arith.mulf %41, %42 : vector<8x32xf32>
    %44 = vector.broadcast %21 : vector<1x32xf32> to vector<8x32xf32>
    %45 = arith.addf %43, %44 : vector<8x32xf32>
    %46 = arith.truncf %45 : vector<8x32xf32> to vector<8x32xbf16>
    %c0_27 = arith.constant 0 : index
    %c0_28 = arith.constant 0 : index
    %47 = vector.load %arg10[%c0_27, %c0_28] : memref<8x32xbf16, #tpu.memory_space<vmem>>, vector<8x32xbf16>
    tpu.vector_store %arg10[%c0_27, %c0_28], %46 {strides = array<i32>} : memref<8x32xbf16, #tpu.memory_space<vmem>>, vector<8x32xbf16>,
    return
  }
  func.func @transform_0(%arg0: i32) -> (i32, i32) {
    %c0_i32 = arith.constant 0 : i32
    %c0_i32_0 = arith.constant 0 : i32
    return %arg0, %c0_i32 : i32, i32
  }
  func.func @transform_1(%arg0: i32) -> (i32, i32) {
    %c0_i32 = arith.constant 0 : i32
    %c0_i32_0 = arith.constant 0 : i32
    return %arg0, %c0_i32 : i32, i32
  }
  func.func @transform_2(%arg0: i32) -> (i32, i32) {
    %c0_i32 = arith.constant 0 : i32
    %c0_i32_0 = arith.constant 0 : i32
    %c0_i32_1 = arith.constant 0 : i32
    return %c0_i32, %c0_i32_0 : i32, i32
  }
  func.func @transform_3(%arg0: i32) -> (i32, i32) {
    %c0_i32 = arith.constant 0 : i32
    %c0_i32_0 = arith.constant 0 : i32
    %c0_i32_1 = arith.constant 0 : i32
    return %c0_i32, %c0_i32_0 : i32, i32
  }
  func.func @transform_4(%arg0: i32) -> (i32, i32) {
    %c0_i32 = arith.constant 0 : i32
    %c0_i32_0 = arith.constant 0 : i32
    %c0_i32_1 = arith.constant 0 : i32
    return %c0_i32, %c0_i32_0 : i32, i32
  }
  func.func @transform_5(%arg0: i32) -> (i32, i32) {
    %c0_i32 = arith.constant 0 : i32
    %c0_i32_0 = arith.constant 0 : i32
    %c0_i32_1 = arith.constant 0 : i32
    return %c0_i32, %c0_i32_0 : i32, i32
  }
  func.func @transform_6(%arg0: i32) -> (i32, i32) {
    %c0_i32 = arith.constant 0 : i32
    %c0_i32_0 = arith.constant 0 : i32
    %c0_i32_1 = arith.constant 0 : i32
    return %c0_i32, %c0_i32_0 : i32, i32
  }
  func.func @transform_7(%arg0: i32) -> (i32, i32) {
    %c0_i32 = arith.constant 0 : i32
    %c0_i32_0 = arith.constant 0 : i32
    %c0_i32_1 = arith.constant 0 : i32
    return %c0_i32, %c0_i32_0 : i32, i32
  }
  func.func @transform_8(%arg0: i32) -> (i32, i32) {
    %c0_i32 = arith.constant 0 : i32
    %c0_i32_0 = arith.constant 0 : i32
    %c0_i32_1 = arith.constant 0 : i32
    return %c0_i32, %c0_i32_0 : i32, i32
  }
  func.func @transform_9(%arg0: i32) -> (i32, i32) {
    %c0_i32 = arith.constant 0 : i32
    %c0_i32_0 = arith.constant 0 : i32
    return %arg0, %c0_i32 : i32, i32
  }
}

module attributes {stable_mosaic.version = 11 : i64} {
  func.func @_mlp_kernel(%arg0: i32, %arg1: memref<8x32xbf16, #tpu.memory_space<vmem>>, %arg2: memref<32x32xf32, #tpu.memory_space<vmem>>, %arg3: memref<1x32xf32, #tpu.memory_space<vmem>>, %arg4: memref<32x2xf32, #tpu.memory_space<vmem>>, %arg5: memref<1x2xf32, #tpu.memory_space<vmem>>, %arg6: memref<8x2xf32, #tpu.memory_space<vmem>>) attributes {dimension_semantics = [#tpu.dimension_semantics<parallel>], iteration_bounds = array<i64: 1>, scalar_prefetch = 0 : i64, scratch_operands = 0 : i64, tpu.core_type = #tpu.core_type<tc>, window_params = [{transform_indices = @transform_0, window_bounds = array<i64: 8, 32>}, {pipeline_mode = #tpu.pipeline_mode<synchronous>, transform_indices = @transform_1, window_bounds = array<i64: 32, 32>}, {pipeline_mode = #tpu.pipeline_mode<synchronous>, transform_indices = @transform_2, window_bounds = array<i64: 1, 32>}, {pipeline_mode = #tpu.pipeline_mode<synchronous>, transform_indices = @transform_3, window_bounds = array<i64: 32, 2>}, {pipeline_mode = #tpu.pipeline_mode<synchronous>, transform_indices = @transform_4, window_bounds = array<i64: 1, 2>}, {transform_indices = @transform_5, window_bounds = array<i64: 8, 2>}]} {
    %c0 = arith.constant 0 : index
    %c0_0 = arith.constant 0 : index
    %0 = vector.load %arg1[%c0, %c0_0] : memref<8x32xbf16, #tpu.memory_space<vmem>>, vector<8x32xbf16>
    %1 = arith.extf %0 : vector<8x32xbf16> to vector<8x32xf32>
    %c0_1 = arith.constant 0 : index
    %c0_2 = arith.constant 0 : index
    %2 = vector.load %arg2[%c0_1, %c0_2] : memref<32x32xf32, #tpu.memory_space<vmem>>, vector<32x32xf32>
    %cst = arith.constant dense<0.000000e+00> : vector<8x32xf32>
    %3 = tpu.matmul %1, %2, %cst {dimension_numbers = #tpu.dot_dimension_numbers<[1], [0], [0], [1], [0, 0, 1, 1], [], []>} : vector<8x32xf32>, vector<32x32xf32>, vector<8x32xf32> -> vector<8x32xf32>
    %c0_3 = arith.constant 0 : index
    %c0_4 = arith.constant 0 : index
    %4 = vector.load %arg3[%c0_3, %c0_4] : memref<1x32xf32, #tpu.memory_space<vmem>>, vector<1x32xf32>
    %5 = vector.broadcast %4 : vector<1x32xf32> to vector<8x32xf32>
    %6 = arith.addf %3, %5 : vector<8x32xf32>
    %cst_5 = arith.constant 0.000000e+00 : f32
    %7 = vector.broadcast %cst_5 : f32 to vector<8x32xf32>
    %8 = arith.maximumf %6, %7 : vector<8x32xf32>
    %c0_6 = arith.constant 0 : index
    %c0_7 = arith.constant 0 : index
    %9 = vector.load %arg4[%c0_6, %c0_7] : memref<32x2xf32, #tpu.memory_space<vmem>>, vector<32x2xf32>
    %cst_8 = arith.constant dense<0.000000e+00> : vector<8x2xf32>
    %10 = tpu.matmul %8, %9, %cst_8 {dimension_numbers = #tpu.dot_dimension_numbers<[1], [0], [0], [1], [0, 0, 1, 1], [], []>} : vector<8x32xf32>, vector<32x2xf32>, vector<8x2xf32> -> vector<8x2xf32>
    %c0_9 = arith.constant 0 : index
    %c0_10 = arith.constant 0 : index
    %11 = vector.load %arg5[%c0_9, %c0_10] : memref<1x2xf32, #tpu.memory_space<vmem>>, vector<1x2xf32>
    %12 = vector.broadcast %11 : vector<1x2xf32> to vector<8x2xf32>
    %13 = arith.addf %10, %12 : vector<8x2xf32>
    %c0_11 = arith.constant 0 : index
    %c0_12 = arith.constant 0 : index
    %14 = vector.load %arg6[%c0_11, %c0_12] : memref<8x2xf32, #tpu.memory_space<vmem>>, vector<8x2xf32>
    tpu.vector_store %arg6[%c0_11, %c0_12], %13 {strides = array<i32>} : memref<8x2xf32, #tpu.memory_space<vmem>>, vector<8x2xf32>,
    return
  }
  func.func @transform_0(%arg0: i32) -> (i32, i32) {
    %c0_i32 = arith.constant 0 : i32
    %c0_i32_0 = arith.constant 0 : i32
    return %arg0, %c0_i32 : i32, i32
  }
  func.func @transform_1(%arg0: i32) -> (i32, i32) {
    %c0_i32 = arith.constant 0 : i32
    %c0_i32_0 = arith.constant 0 : i32
    %c0_i32_1 = arith.constant 0 : i32
    return %c0_i32, %c0_i32_0 : i32, i32
  }
  func.func @transform_2(%arg0: i32) -> (i32, i32) {
    %c0_i32 = arith.constant 0 : i32
    %c0_i32_0 = arith.constant 0 : i32
    %c0_i32_1 = arith.constant 0 : i32
    return %c0_i32, %c0_i32_0 : i32, i32
  }
  func.func @transform_3(%arg0: i32) -> (i32, i32) {
    %c0_i32 = arith.constant 0 : i32
    %c0_i32_0 = arith.constant 0 : i32
    %c0_i32_1 = arith.constant 0 : i32
    return %c0_i32, %c0_i32_0 : i32, i32
  }
  func.func @transform_4(%arg0: i32) -> (i32, i32) {
    %c0_i32 = arith.constant 0 : i32
    %c0_i32_0 = arith.constant 0 : i32
    %c0_i32_1 = arith.constant 0 : i32
    return %c0_i32, %c0_i32_0 : i32, i32
  }
  func.func @transform_5(%arg0: i32) -> (i32, i32) {
    %c0_i32 = arith.constant 0 : i32
    %c0_i32_0 = arith.constant 0 : i32
    return %arg0, %c0_i32 : i32, i32
  }
}

</mosaic_0001>

<bundles_post_ra>
// kernel: my_network_mapper.7
= control target key start
LH: loop header
LB: loop body
LE: loop exit
PB: predicated region body
PF: predicated region fallthrough
CT: control target
= control target key end

     0   :  { %vm39_vm0 = vcmask 1043456   ;;  %vm35_vm1 = vcmask 31744   ;;  %v281_v0 = vmov 0.0   ;;  %vm282_vm2 = vmmov 0   ;;  %s357_s1 = inlined_call_operand.vmem [shape: f32[4,32], index: 1, kind: input, shape index: {}]   ;;  %s358_s0 = inlined_call_operand.vmem [shape: f32[8,4], index: 0, kind: input, shape index: {}]   ;;  %s359_s3 = inlined_call_operand.vmem [shape: f32[32,32], index: 3, kind: input, shape index: {}]   ;;  %s360_s2 = inlined_call_operand.vmem [shape: f32[1,32], index: 2, kind: input, shape index: {}]   ;;  %s361_s4 = inlined_call_operand.vmem [shape: f32[1,32], index: 4, kind: input, shape index: {}]   ;;  %s362_s5 = inlined_call_operand.vmem [shape: f32[1,32], index: 5, kind: input, shape index: {}]   ;;  %s363_s6 = inlined_call_operand.vmem [shape: f32[1,32], index: 6, kind: input, shape index: {}]   ;;  %s364_s7 = inlined_call_operand.vmem [shape: bf16[8,32], index: 7, kind: output, shape index: {}]  }
   0x1   :  { %254 = vmatprep.subr.mxu0 %v281_v0  ;;  %v27_v1 = vld [vmem:[%s357_s1] sm:$0xf]  ;;  %256 = vmatprep.mubr.msk.f32.mxu0 %vm282_vm2, %v281_v0  ;;  %v283_v4 = vmov 0.0|0.0   ;;  %v115_v5 = vld [vmem:[%s359_s3 + $0x8] sm:$0xff]  ;;  %v116_v7 = vld [vmem:[%s359_s3 + $0x10] sm:$0xff]  ;;  %vm125_vm3 = vcmask 261120  }
   0x2   :  { %v26_v2 = vld [vmem:[%s358_s0] sm:$0xff]  ;;  %255 = vmatpush3.msk.msra.mxu0 %vm39_vm0, %v27_v1  ;;  %270 = vmatprep.subr.bf16.mxu1 %v283_v4  ;;  %v117_v8 = vld [vmem:[%s359_s3 + $0x18] sm:$0xff]  ;;  %vm234_vm4 = vcmask 257024  }
   0x3   :  { %v114_v3 = vld [vmem:[%s359_s3] sm:$0xff]  ;;  %257 = vmatmul.mubr.msk.f32.vlgmr.msra.gmra.mrb[0].mxu0 %vm35_vm1, %v26_v2  ;;  %267 = vmatprep.mubr.msk.f32.mxu1 %vm282_vm2, %v281_v0  ;;  %v274_v9 = vpack.c.bf16 %v117_v8, %v116_v7 }
   0x4   :  { %v271_v6 = vpack.c.bf16 %v115_v5, %v114_v3  ;;  %v240_v10 = vld [vmem:[%s360_s2] ss:$0 sm:$0xff] }
   0x5   :  { %v243_v15 = vld [vmem:[%s361_s4] ss:$0 sm:$0xff] }
   0x6   :  { %272 = vmatpush3.bf16.msra.mxu1 %v271_v6  ;;  %v245_v33 = vld [vmem:[%s362_s5] ss:$0 sm:$0xff] }
   0x7   :  { %273 = vmatprep.subr.bf16.mxu1 %v283_v4  ;;  %v246_v35 = vld [vmem:[%s363_s6] ss:$0 sm:$0xff] }
   0xa   :  { %275 = vmatpush3.bf16.msra.mxu1 %v274_v9 }
  0xd6   :  { %v109_v11 = vpop.f32.mrb[0].mxu0 }
  0xd7   :  { %v110_v12 = vadd.f32 %v240_v10, %v109_v11  ;;  %v258_v13 = vpop.f32.mrb[1].mxu0 }
  0xd9   :  { %v113_v14 = vmax.f32 %v110_v12, 0.0 }
  0xdb   :  { %268 = vmatmul.mubr.msk.f32.vlgmr.msra.gmra.mrb[0].mxu1 %vm125_vm3, %v113_v14 }
 0x1ae   :  { %v195_v16 = vpop.f32.mrb[0].mxu1 }
 0x1af   :  { %v196_v17 = vadd.f32 %v243_v15, %v195_v16  ;;  %v269_v18 = vpop.f32.mrb[1].mxu1 }
 0x1b1   :  { %v199_v19 = vmax.f32 %v196_v17, 0.0 }
 0x1b3   :  { %v202_v20 = vsel %vm125_vm3, %v199_v19, 0.0  ;;  %v207_v21 = vmul.f32 %v199_v19, %v199_v19 }
 0x1b4   :  { %203 = vadd.xlane.f32.xlu0 %v202_v20 }
 0x1b5   :  { %v208_v22 = vsel %vm125_vm3, %v207_v21, 0.0 }
 0x1b8   :  { %209 = vadd.xlane.f32.xlu0 %v208_v22 }
 0x241   :  { %v204_v23 = vpop.xlane.xlu0 %203 }
 0x242   :  { %v206_v24 = vmul.f32 0.03125, %v204_v23 }
 0x244   :  { %v212_v26 = vmul.f32 %v206_v24, %v206_v24  ;;  %v215_v31 = vsub.f32 %v199_v19, %v206_v24 }
 0x245   :  { %v210_v25 = vpop.xlane.xlu0 %209 }
 0x246   :  { %v211_v27 = vmul.f32 0.03125, %v210_v25 }
 0x248   :  { %v213_v28 = vsub.f32 %v211_v27, %v212_v26 }
 0x24a   :  { %v214_v29 = vmax.f32 %v213_v28, 0.0 }
 0x24c   :  { %v216_v30 = vadd.f32 1e-05, %v214_v29 }
 0x24e   :  { %279 = vrsqrt.f32 %v216_v30 }
 0x258   :  { %v280_v32 = vpop.eup %279 }
 0x259   :  { %v218_v34 = vmul.f32 %v280_v32, %v215_v31 }
 0x25b   :  { %v225_v36 = vmul.f32 %v245_v33, %v218_v34 }
 0x25d   :  { %v232_v37 = vadd.f32 %v246_v35, %v225_v36 }
 0x25f   :  { %v233_v38 = vpack.c.bf16 %v232_v37, %v232_v37 }
 0x261   :  { %235 = vst.msk [vmem:[%s364_s7] sm:$0xf] %vm234_vm4, %v233_v38 }

// kernel: my_network_mapper.8
= control target key start
LH: loop header
LB: loop body
LE: loop exit
PB: predicated region body
PF: predicated region fallthrough
CT: control target
= control target key end

     0   :  { %s646_s24 = smov 0   ;;  %s694_s0 = inlined_call_operand.vmem [shape: f32[16,3], index: 0, kind: input, shape index: {}]   ;;  %s695_s1 = inlined_call_operand.vmem [shape: f32[3,32], index: 1, kind: input, shape index: {}]   ;;  %s696_s2 = inlined_call_operand.vmem [shape: f32[1,32], index: 2, kind: input, shape index: {}]   ;;  %s697_s3 = inlined_call_operand.vmem [shape: f32[32,32], index: 3, kind: input, shape index: {}]   ;;  %s698_s4 = inlined_call_operand.vmem [shape: f32[1,32], index: 4, kind: input, shape index: {}]   ;;  %s699_s5 = inlined_call_operand.vmem [shape: f32[1,32], index: 5, kind: input, shape index: {}]   ;;  %s700_s6 = inlined_call_operand.vmem [shape: f32[1,32], index: 6, kind: input, shape index: {}]   ;;  %s701_s7 = inlined_call_operand.vmem [shape: bf16[16,32], index: 7, kind: output, shape index: {}]  }
   0x1 LB: > { %s537_s25 = sadd.s32 4294967295, %s601_s24   ;;  %p541_p0 = scmp.ge.s32.totalorder %s601_s24, 1  ;;  %s601_s24 = sphi %s646_s24, %s17_s24  }
   0x2   : > { %p236_p1 = scmp.lt.s32.totalorder %s601_s24, 3 }
   0x4   : > { %p237_p2 = pnand %p541_p0, %p236_p1 }
   0x5   : > { %v275_v0 = vld [vmem:[%s695_s1] sm:$0x7] (!%p237_p2)  ;;  %vm287_vm0 = vcmask (!%p237_p2), 1042432   ;;  %p266_p3 = scmp.lt.s32.totalorder (!%p237_p2), %s537_s25, 1  ;;  %v603_v1 = vmov (!%p237_p2), 0.0   ;;  %vm604_vm1 = vmmov (!%p237_p2), 0  }
   0x6   : > { %240 = sbr.rel (%p237_p2) target bundleno = 624 (0x270), region = 48  ;;  %560 = vmatprep.subr.mxu0 (!%p237_p2), %v603_v1  ;;  %562 = vmatprep.mubr.msk.f32.mxu0 (!%p237_p2), %vm604_vm1, %v603_v1  ;;  %v362_v2 = vld [vmem:[%s697_s3] sm:$0xff] (!%p237_p2)  ;;  %v363_v3 = vld [vmem:[%s697_s3 + $0x8] sm:$0xff] (!%p237_p2)  ;;  %v605_v4 = vmov (!%p237_p2), 0.0|0.0   ;;  %vm283_vm2 = vcmask (!%p237_p2), 23552   ;;  %v364_v7 = vld [vmem:[%s697_s3 + $0x10] sm:$0xff] (!%p237_p2) }
   0x7   : > { %561 = vmatpush3.msk.msra.mxu0 (!%p237_p2), %vm287_vm0, %v275_v0  ;;  %576 = vmatprep.subr.bf16.mxu1 (!%p237_p2), %v605_v4  ;;  %v577_v5 = vpack.c.bf16 (!%p237_p2), %v363_v3, %v362_v2  ;;  %v365_v8 = vld [vmem:[%s697_s3 + $0x18] sm:$0xff] (!%p237_p2)  ;;  %v544_v10 = vld [vmem:[%s696_s2] ss:$0 sm:$0xff] (!%p237_p2)  ;;  %vm373_vm3 = vcmask (!%p237_p2), 261120   ;;  %vm482_vm4 = vcmask (!%p237_p2), 257024  }
   0x8   : > { %573 = vmatprep.mubr.msk.f32.mxu1 (!%p237_p2), %vm604_vm1, %v603_v1  ;;  %v580_v9 = vpack.c.bf16 (!%p237_p2), %v365_v8, %v364_v7  ;;  %v547_v15 = vld [vmem:[%s698_s4] ss:$0 sm:$0xff] (!%p237_p2) }
   0x9   : > { %578 = vmatpush3.bf16.msra.mxu1 (!%p237_p2), %v577_v5  ;;  %v549_v33 = vld [vmem:[%s699_s5] ss:$0 sm:$0xff] (!%p237_p2) }
   0xa   : > { %579 = vmatprep.subr.bf16.mxu1 (!%p237_p2), %v605_v4  ;;  %v550_v35 = vld [vmem:[%s700_s6] ss:$0 sm:$0xff] (!%p237_p2) }
   0xd   : > { %s703_s25 = smov (!%p266_p3, %s537_s25), 1  ;;  %581 = vmatpush3.bf16.msra.mxu1 %v580_v9 }
   0xe   : > { %s542_s9 = sshll.u32 %s703_s25, 3  ;;  %s543_s27 = sshll.u32 %s703_s25, 2 }
   0xf   : > { %s269_s12 = scalar_lea.vmem %s694_s0, %s542_s9  ;;  %s273_s30 = scalar_lea.vmem %s701_s7, %s543_s27 }
  0x10   : > { %v274_v6 = vld [vmem:[%s269_s12] sm:$0xff] }
  0x11   : > { %563 = vmatmul.mubr.msk.f32.vlgmr.msra.gmra.mrb[0].mxu0 %vm283_vm2, %v274_v6 }
  0xe4   : > { %v357_v11 = vpop.f32.mrb[0].mxu0 }
  0xe5   : > { %v358_v12 = vadd.f32 %v544_v10, %v357_v11  ;;  %v564_v13 = vpop.f32.mrb[1].mxu0 }
  0xe7   : > { %v361_v14 = vmax.f32 %v358_v12, 0.0 }
  0xe9   : > { %574 = vmatmul.mubr.msk.f32.vlgmr.msra.gmra.mrb[0].mxu1 %vm373_vm3, %v361_v14 }
 0x1bc   : > { %v443_v16 = vpop.f32.mrb[0].mxu1 }
 0x1bd   : > { %v444_v17 = vadd.f32 %v547_v15, %v443_v16  ;;  %v575_v18 = vpop.f32.mrb[1].mxu1 }
 0x1bf   : > { %v447_v19 = vmax.f32 %v444_v17, 0.0 }
 0x1c1   : > { %v450_v20 = vsel %vm373_vm3, %v447_v19, 0.0  ;;  %v455_v21 = vmul.f32 %v447_v19, %v447_v19 }
 0x1c2   : > { %451 = vadd.xlane.f32.xlu0 %v450_v20 }
 0x1c3   : > { %v456_v22 = vsel %vm373_vm3, %v455_v21, 0.0 }
 0x1c6   : > { %457 = vadd.xlane.f32.xlu0 %v456_v22 }
 0x24f   : > { %v452_v23 = vpop.xlane.xlu0 %451 }
 0x250   : > { %v454_v24 = vmul.f32 0.03125, %v452_v23 }
 0x252   : > { %v460_v26 = vmul.f32 %v454_v24, %v454_v24  ;;  %v463_v31 = vsub.f32 %v447_v19, %v454_v24 }
 0x253   : > { %v458_v25 = vpop.xlane.xlu0 %457 }
 0x254   : > { %v459_v27 = vmul.f32 0.03125, %v458_v25 }
 0x256   : > { %v461_v28 = vsub.f32 %v459_v27, %v460_v26 }
 0x258   : > { %v462_v29 = vmax.f32 %v461_v28, 0.0 }
 0x25a   : > { %v464_v30 = vadd.f32 1e-05, %v462_v29 }
 0x25c   : > { %593 = vrsqrt.f32 %v464_v30 }
 0x266   : > { %v594_v32 = vpop.eup %593 }
 0x267   : > { %v466_v34 = vmul.f32 %v594_v32, %v463_v31 }
 0x269   : > { %v473_v36 = vmul.f32 %v549_v33, %v466_v34 }
 0x26b   : > { %v480_v37 = vadd.f32 %v550_v35, %v473_v36 }
 0x26d   : > { %v481_v38 = vpack.c.bf16 %v480_v37, %v480_v37 }
 0x26f   : > { %483 = vst.msk [vmem:[%s273_s30] sm:$0xf] %vm482_vm4, %v481_v38 }
 0x270 PF: > { %s17_s24 = sadd.s32 1, %s601_s24  }
 0x271   : > { %p14_p4 = scmp.ge.s32.totalorder %s17_s24, 4  }
 0x273   :  { %16 = sbr.rel (!%p14_p4) target bundleno = 1 (0x1), region = 78 }

// kernel: my_network_mapper.9
= control target key start
LH: loop header
LB: loop body
LE: loop exit
PB: predicated region body
PF: predicated region fallthrough
CT: control target
= control target key end

     0   :  { %s894_s13 = smov 0   ;;  %s964_s0 = inlined_call_operand.vmem [shape: bf16[16,32], index: 0, kind: input, shape index: {}]   ;;  %s965_s1 = inlined_call_operand.vmem [shape: bf16[16,32], index: 1, kind: input, shape index: {}]   ;;  %s966_s2 = inlined_call_operand.vmem [shape: bf16[16,32], index: 2, kind: input, shape index: {}]   ;;  %s967_s3 = inlined_call_operand.vmem [shape: bf16[32,64], index: 3, kind: input, shape index: {}]   ;;  %s968_s4 = inlined_call_operand.vmem [shape: bf16[32,32], index: 4, kind: input, shape index: {}]   ;;  %s969_s5 = inlined_call_operand.vmem [shape: f32[1,32], index: 5, kind: input, shape index: {}]   ;;  %s970_s6 = inlined_call_operand.vmem [shape: bf16[32,32], index: 6, kind: input, shape index: {}]   ;;  %s971_s7 = inlined_call_operand.vmem [shape: f32[1,32], index: 7, kind: input, shape index: {}]   ;;  %s972_s8 = inlined_call_operand.vmem [shape: f32[1,32], index: 8, kind: input, shape index: {}]   ;;  %s973_s9 = inlined_call_operand.vmem [shape: f32[1,32], index: 9, kind: input, shape index: {}]   ;;  %s974_s10 = inlined_call_operand.vmem [shape: bf16[16,64], index: 10, kind: output, shape index: {}]  }
   0x1 LB: > { %s746_s14 = sadd.s32 4294967295, %s833_s13   ;;  %p750_p0 = scmp.ge.s32.totalorder %s833_s13, 1  ;;  %s833_s13 = sphi %s894_s13, %s20_s13  }
   0x2   : > { %p329_p1 = scmp.lt.s32.totalorder %s833_s13, 3 }
   0x4   : > { %p330_p2 = pnand %p750_p0, %p329_p1 }
   0x5   : > { %v816_v0 = vld [vmem:[%s967_s3] sm:$0xff] (!%p330_p2)   ;;  %v835_v1 = vmov (!%p330_p2), 0.0   ;;  %v817_v2 = vld [vmem:[%s967_s3 + $0x8] sm:$0xff] (!%p330_p2)   ;;  %vm836_vm0 = vmmov (!%p330_p2), 0   ;;  %p373_p3 = scmp.lt.s32.totalorder (!%p330_p2), %s746_s14, 1  ;;  %vm395_vm1 = vcmask (!%p330_p2), 1043456  }
   0x6   : > { %333 = sbr.rel (%p330_p2) target bundleno = 869 (0x365), region = 60  ;;  %780 = vmatprep.subr.bf16.mxu0 (!%p330_p2), %v835_v1  ;;  %788 = vmatprep.subr.bf16.mxu1 (!%p330_p2), %v835_v1  ;;  %v819_v3 = vld [vmem:[%s968_s4] sm:$0xff] (!%p330_p2)   ;;  %v820_v4 = vld [vmem:[%s968_s4 + $0x8] sm:$0xff] (!%p330_p2)   ;;  %vm415_vm2 = vcmask (!%p330_p2), 261120   ;;  %s837_s18 = smov (!%p330_p2), 96   ;;  %vm667_vm3 = vcmask (!%p330_p2), 519168  }
   0x7   : > { %781 = vmatpush3.bf16.msra.mxu0 (!%p330_p2), %v816_v0  ;;  %784 = vmatprep.mubr.msk.bf16.mxu0 (!%p330_p2), %vm836_vm0, %v835_v1  ;;  %v821_v9 = vld [vmem:[%s970_s6] sm:$0xff] (!%p330_p2)   ;;  %v822_v10 = vld [vmem:[%s970_s6 + $0x8] sm:$0xff] (!%p330_p2)   ;;  %s838_s28 = smov (!%p330_p2), 32  }
   0x8   : > { %782 = vmatprep.subr.bf16.mxu0 (!%p330_p2), %v835_v1  ;;  %792 = vmatprep.mubr.msk.bf16.mxu1 (!%p330_p2), %vm836_vm0, %v835_v1  ;;  %v759_v19 = vld [vmem:[%s969_s5] ss:$0 sm:$0xff] (!%p330_p2) }
   0x9   : > { %789 = vmatpush3.bf16.msra.mxu1 (!%p330_p2), %v819_v3  ;;  %v763_v30 = vld [vmem:[%s971_s7] ss:$0 sm:$0xff] (!%p330_p2) }
   0xa   : > { %790 = vmatprep.subr.bf16.mxu1 (!%p330_p2), %v835_v1  ;;  %v767_v63 = vld [vmem:[%s972_s8] ss:$0 sm:$0xff] (!%p330_p2) }
   0xb   : > { %783 = vmatpush3.bf16.msra.mxu0 (!%p330_p2), %v817_v2 }
   0xc   : > { %796 = vmatprep.subr.bf16.mxu0 (!%p330_p2), %v835_v1 }
   0xd   : > { %s976_s14 = smov (!%p373_p3, %s746_s14), 1  ;;  %791 = vmatpush3.bf16.msra.mxu1 %v820_v4 }
   0xe   : > { %s916_s23 = sshll.u32 %s976_s14, 2 }
   0xf   : > { %s376_s26 = scalar_lea.vmem %s964_s0, %s916_s23  ;;  %s380_s29 = scalar_lea.vmem %s965_s1, %s916_s23 }
  0x10   : > { %v390_v5 = vld [vmem:[%s376_s26] sm:$0xf]  ;;  %s384_s12 = scalar_lea.vmem %s966_s2, %s916_s23  ;;  %s388_s11 = scalar_lea.vmem %s974_s10, %s916_s23 }
  0x11   : > { %v818_v6 = vld [vmem:[%s380_s29] ss:$0 sps:$4 sm:$0xff]  }
  0x12   : > { %v459_v7 = vld [vmem:[%s384_s12] sm:$0xf]  ;;  %v398_v8 = vsel %vm395_vm1, %v390_v5, %v818_v6 }
  0x13   : > { %785 = vmatmul.mubr.msk.bf16.vlgmr.msra.gmra.mrb[0].mxu0 %vm415_vm2, %v398_v8  ;;  %793 = vmatmul.mubr.msk.bf16.vlgmr.msra.gmra.mrb[0].mxu1 %vm415_vm2, %v459_v7 }
  0x14   : > { %800 = vmatprep.mubr.msk.bf16.mxu0 %vm836_vm0, %v835_v1  ;;  %797 = vmatpush3.bf16.msra.mxu0 %v821_v9 }
  0x15   : > { %798 = vmatprep.subr.bf16.mxu0 %v835_v1  ;;  %v768_v1 = vld [vmem:[%s973_s9] ss:$0 sm:$0xff] }
  0x18   : > { %799 = vmatpush3.bf16.msra.mxu0 %v822_v10 }
  0xe6   : > { %v452_v11 = vpop.f32.mrb[0].mxu0  ;;  %v520_v12 = vpop.f32.mrb[0].mxu1 }
  0xe7   : > { %v786_v13 = vpop.f32.mrb[1].mxu0  ;;  %v794_v14 = vpop.f32.mrb[1].mxu1  ;;  %v521_v20 = vadd.f32 %v759_v19, %v520_v12 }
  0xe8   : > { %v455_v15 = vpop.f32.mrb[2].mxu0  ;;  %v523_v16 = vpop.f32.mrb[2].mxu1 }
  0xe9   : > { %527 = vrot.lane.b32.xlu0 %v455_v15, %s837_s18  ;;  %v787_v17 = vpop.f32.mrb[3].mxu0  ;;  %v795_v18 = vpop.f32.mrb[3].mxu1 }
  0xed   : > { %533 = vrot.lane.b32.xlu0 %v452_v11, %s837_s18 }
 0x15b   : > { %v528_v21 = vpop.permute.xlu0 %527 }
 0x15c   : > { %v530_v22 = vadd.f32 %v528_v21, %v452_v11 }
 0x15e   : > { %v531_v23 = vadd.f32 %v530_v22, %v521_v20 }
 0x15f   : > { %v534_v24 = vpop.permute.xlu0 %533 }
 0x160   : > { %v536_v25 = vadd.f32 %v534_v24, %v455_v15  ;;  %v538_v27 = vmax.f32 %v531_v23, 0.0 }
 0x162   : > { %v537_v26 = vadd.f32 %v536_v25, %v521_v20 }
 0x164   : > { %v539_v28 = vmax.f32 %v537_v26, 0.0 }
 0x166   : > { %v540_v29 = vpack.c.bf16 %v539_v28, %v538_v27 }
 0x168   : > { %801 = vmatmul.mubr.msk.bf16.vlgmr.msra.gmra.mrb[4].mxu0 %vm415_vm2, %v540_v29 }
 0x23b   : > { %v601_v31 = vpop.f32.mrb[4].mxu0 }
 0x23c   : > { %v602_v32 = vadd.f32 %v763_v30, %v601_v31  ;;  %v802_v33 = vpop.f32.mrb[5].mxu0 }
 0x23d   : > { %v604_v34 = vpop.f32.mrb[6].mxu0 }
 0x23e   : > { %v608_v35 = vmax.f32 %v602_v32, 0.0  ;;  %v605_v36 = vadd.f32 %v763_v30, %v604_v34  ;;  %v803_v37 = vpop.f32.mrb[7].mxu0 }
 0x240   : > { %v609_v38 = vmax.f32 %v605_v36, 0.0  ;;  %v612_v39 = vsel %vm415_vm2, %v608_v35, 0.0  ;;  %v621_v43 = vmul.f32 %v608_v35, %v608_v35 }
 0x241   : > { %613 = vadd.xlane.f32.xlu0 %v612_v39 }
 0x242   : > { %v615_v40 = vsel %vm415_vm2, %v609_v38, 0.0  ;;  %v622_v41 = vmul.f32 %v609_v38, %v609_v38  ;;  %v623_v44 = vsel %vm415_vm2, %v621_v43, 0.0 }
 0x243   : > { %616 = vadd.xlane.f32.xlu1 %v615_v40 }
 0x244   : > { %v626_v42 = vsel %vm415_vm2, %v622_v41, 0.0 }
 0x247   : > { %627 = vadd.xlane.f32.xlu1 %v626_v42 }
 0x24b   : > { %624 = vadd.xlane.f32.xlu1 %v623_v44 }
 0x2ce   : > { %v614_v47 = vpop.xlane.xlu0 %613 }
 0x2cf   : > { %v619_v49 = vmul.f32 0.03125, %v614_v47 }
 0x2d0   : > { %v617_v45 = vpop.xlane.xlu1 %616 }
 0x2d1   : > { %v620_v46 = vmul.f32 0.03125, %v617_v45  ;;  %v631_v54 = vmul.f32 %v619_v49, %v619_v49  ;;  %v637_v2 = vsub.f32 %v608_v35, %v619_v49 }
 0x2d3   : > { %v632_v50 = vmul.f32 %v620_v46, %v620_v46  ;;  %v638_v61 = vsub.f32 %v609_v38, %v620_v46 }
 0x2d4   : > { %v628_v48 = vpop.xlane.xlu1 %627 }
 0x2d5   : > { %v630_v51 = vmul.f32 0.03125, %v628_v48 }
 0x2d7   : > { %v634_v52 = vsub.f32 %v630_v51, %v632_v50 }
 0x2d8   : > { %v625_v53 = vpop.xlane.xlu1 %624 }
 0x2d9   : > { %v636_v55 = vmax.f32 %v634_v52, 0.0  ;;  %v629_v56 = vmul.f32 0.03125, %v625_v53 }
 0x2db   : > { %v640_v57 = vadd.f32 1e-05, %v636_v55  ;;  %v633_v58 = vsub.f32 %v629_v56, %v631_v54 }
 0x2dd   : > { %823 = vrsqrt.f32 %v640_v57  ;;  %v635_v59 = vmax.f32 %v633_v58, 0.0 }
 0x2df   : > { %v639_v60 = vadd.f32 1e-05, %v635_v59 }
 0x2e1   : > { %825 = vrsqrt.f32 %v639_v60 }
 0x2e7   : > { %v824_v62 = vpop.eup %823 }
 0x2e8   : > { %v644_v0 = vmul.f32 %v824_v62, %v638_v61 }
 0x2ea   : > { %v652_v3 = vmul.f32 %v767_v63, %v644_v0 }
 0x2eb   : > { %v826_v4 = vpop.eup %825 }
 0x2ec   : > { %v660_v5 = vadd.f32 %v768_v1, %v652_v3  ;;  %v643_v6 = vmul.f32 %v826_v4, %v637_v2 }
 0x2ee   : > { %662 = vrot.lane.b32.xlu1 %v660_v5, %s838_s28  ;;  %v651_v7 = vmul.f32 %v767_v63, %v643_v6 }
 0x2f0   : > { %v659_v8 = vadd.f32 %v768_v1, %v651_v7 }
 0x360   : > { %v663_v9 = vpop.permute.xlu1 %662 }
 0x361   : > { %v665_v10 = vsel %vm415_vm2, %v659_v8, %v663_v9 }
 0x362   : > { %v666_v11 = vpack.c.bf16 %v665_v10, %v665_v10 }
 0x364   : > { %668 = vst.msk [vmem:[%s388_s11] sm:$0xf] %vm667_vm3, %v666_v11 }
 0x365 PF: > { %s20_s13 = sadd.s32 1, %s833_s13  }
 0x366   : > { %p17_p4 = scmp.ge.s32.totalorder %s20_s13, 4  }
 0x368   :  { %19 = sbr.rel (!%p17_p4) target bundleno = 1 (0x1), region = 96 }

// kernel: my_network_mapper.10
= control target key start
LH: loop header
LB: loop body
LE: loop exit
PB: predicated region body
PF: predicated region fallthrough
CT: control target
= control target key end

     0   :  { %v327_v0 = vmov 0.0   ;;  %vm328_vm0 = vmmov 0   ;;  %vm55_vm1 = vcmask 261120   ;;  %vm265_vm2 = vcmask 257024   ;;  %s426_s3 = inlined_call_operand.vmem [shape: bf16[32,32], index: 3, kind: input, shape index: {}]   ;;  %s427_s2 = inlined_call_operand.vmem [shape: bf16[32,32], index: 2, kind: input, shape index: {}]   ;;  %s428_s1 = inlined_call_operand.vmem [shape: bf16[8,32], index: 1, kind: input, shape index: {}]   ;;  %s429_s0 = inlined_call_operand.vmem [shape: bf16[8,32], index: 0, kind: input, shape index: {}]   ;;  %s430_s5 = inlined_call_operand.vmem [shape: bf16[32,32], index: 5, kind: input, shape index: {}]   ;;  %s431_s4 = inlined_call_operand.vmem [shape: f32[1,32], index: 4, kind: input, shape index: {}]   ;;  %s432_s6 = inlined_call_operand.vmem [shape: f32[1,32], index: 6, kind: input, shape index: {}]   ;;  %s433_s7 = inlined_call_operand.vmem [shape: f32[1,32], index: 7, kind: input, shape index: {}]   ;;  %s434_s8 = inlined_call_operand.vmem [shape: f32[1,32], index: 8, kind: input, shape index: {}]   ;;  %s435_s9 = inlined_call_operand.vmem [shape: bf16[8,32], index: 9, kind: output, shape index: {}]  }
   0x1   :  { %293 = vmatprep.subr.bf16.mxu0 %v327_v0  ;;  %301 = vmatprep.subr.bf16.mxu1 %v327_v0  ;;  %v319_v1 = vld [vmem:[%s426_s3] sm:$0xff]   ;;  %v321_v3 = vld [vmem:[%s426_s3 + $0x8] sm:$0xff]  }
   0x2   :  { %v320_v2 = vld [vmem:[%s427_s2] sm:$0xff]   ;;  %297 = vmatprep.mubr.msk.bf16.mxu0 %vm328_vm0, %v327_v0  ;;  %305 = vmatprep.mubr.msk.bf16.mxu1 %vm328_vm0, %v327_v0  ;;  %v322_v4 = vld [vmem:[%s427_s2 + $0x8] sm:$0xff]  }
   0x3   :  { %294 = vmatpush3.bf16.msra.mxu0 %v319_v1  ;;  %302 = vmatpush3.bf16.msra.mxu1 %v320_v2  ;;  %v38_v5 = vld [vmem:[%s428_s1] sm:$0xf]  ;;  %v324_v8 = vld [vmem:[%s430_s5 + $0x8] sm:$0xff]  }
   0x4   :  { %295 = vmatprep.subr.bf16.mxu0 %v327_v0  ;;  %303 = vmatprep.subr.bf16.mxu1 %v327_v0  ;;  %v33_v6 = vld [vmem:[%s429_s0] sm:$0xf] }
   0x5   :  { %v323_v7 = vld [vmem:[%s430_s5] sm:$0xff]  }
   0x6   :  { %v277_v11 = vld [vmem:[%s431_s4] ss:$0 sm:$0xff] }
   0x7   :  { %296 = vmatpush3.bf16.msra.mxu0 %v321_v3  ;;  %304 = vmatpush3.bf16.msra.mxu1 %v322_v4  ;;  %v278_v22 = vld [vmem:[%s432_s6] ss:$0 sm:$0xff] }
   0x8   :  { %309 = vmatprep.subr.bf16.mxu0 %v327_v0  ;;  %v282_v42 = vld [vmem:[%s433_s7] ss:$0 sm:$0xff] }
   0x9   :  { %v283_v44 = vld [vmem:[%s434_s8] ss:$0 sm:$0xff] }
   0xa   :  { %298 = vmatmul.mubr.msk.bf16.vlgmr.msra.gmra.mrb[0].mxu0 %vm55_vm1, %v38_v5  ;;  %306 = vmatmul.mubr.msk.bf16.vlgmr.msra.gmra.mrb[0].mxu1 %vm55_vm1, %v33_v6 }
   0xb   :  { %313 = vmatprep.mubr.msk.bf16.mxu0 %vm328_vm0, %v327_v0  ;;  %310 = vmatpush3.bf16.msra.mxu0 %v323_v7 }
   0xc   :  { %311 = vmatprep.subr.bf16.mxu0 %v327_v0 }
   0xf   :  { %312 = vmatpush3.bf16.msra.mxu0 %v324_v8 }
  0xdd   :  { %v93_v9 = vpop.f32.mrb[0].mxu0  ;;  %v148_v10 = vpop.f32.mrb[0].mxu1 }
  0xde   :  { %v299_v12 = vpop.f32.mrb[1].mxu0  ;;  %v149_v13 = vadd.f32 %v148_v10, %v93_v9  ;;  %v307_v14 = vpop.f32.mrb[1].mxu1 }
  0xdf   :  { %v96_v15 = vpop.f32.mrb[2].mxu0  ;;  %v151_v16 = vpop.f32.mrb[2].mxu1 }
  0xe0   :  { %v300_v17 = vpop.f32.mrb[3].mxu0  ;;  %v161_v18 = vadd.f32 %v277_v11, %v149_v13  ;;  %v308_v19 = vpop.f32.mrb[3].mxu1 }
  0xe2   :  { %v162_v20 = vmax.f32 %v161_v18, 0.0 }
  0xe4   :  { %v163_v21 = vpack.c.bf16 %v162_v20, %v162_v20 }
  0xe6   :  { %314 = vmatmul.mubr.msk.bf16.vlgmr.msra.gmra.mrb[4].mxu0 %vm55_vm1, %v163_v21 }
 0x1b9   :  { %v224_v23 = vpop.f32.mrb[4].mxu0 }
 0x1ba   :  { %v225_v24 = vadd.f32 %v278_v22, %v224_v23  ;;  %v315_v25 = vpop.f32.mrb[5].mxu0 }
 0x1bb   :  { %v227_v26 = vpop.f32.mrb[6].mxu0 }
 0x1bc   :  { %v230_v27 = vmax.f32 %v225_v24, 0.0  ;;  %v316_v28 = vpop.f32.mrb[7].mxu0 }
 0x1be   :  { %v233_v29 = vsel %vm55_vm1, %v230_v27, 0.0  ;;  %v238_v30 = vmul.f32 %v230_v27, %v230_v27 }
 0x1bf   :  { %234 = vadd.xlane.f32.xlu0 %v233_v29 }
 0x1c0   :  { %v239_v31 = vsel %vm55_vm1, %v238_v30, 0.0 }
 0x1c3   :  { %240 = vadd.xlane.f32.xlu0 %v239_v31 }
 0x24c   :  { %v235_v32 = vpop.xlane.xlu0 %234 }
 0x24d   :  { %v237_v33 = vmul.f32 0.03125, %v235_v32 }
 0x24f   :  { %v243_v35 = vmul.f32 %v237_v33, %v237_v33  ;;  %v246_v40 = vsub.f32 %v230_v27, %v237_v33 }
 0x250   :  { %v241_v34 = vpop.xlane.xlu0 %240 }
 0x251   :  { %v242_v36 = vmul.f32 0.03125, %v241_v34 }
 0x253   :  { %v244_v37 = vsub.f32 %v242_v36, %v243_v35 }
 0x255   :  { %v245_v38 = vmax.f32 %v244_v37, 0.0 }
 0x257   :  { %v247_v39 = vadd.f32 1e-05, %v245_v38 }
 0x259   :  { %325 = vrsqrt.f32 %v247_v39 }
 0x263   :  { %v326_v41 = vpop.eup %325 }
 0x264   :  { %v249_v43 = vmul.f32 %v326_v41, %v246_v40 }
 0x266   :  { %v256_v45 = vmul.f32 %v282_v42, %v249_v43 }
 0x268   :  { %v263_v46 = vadd.f32 %v283_v44, %v256_v45 }
 0x26a   :  { %v264_v47 = vpack.c.bf16 %v263_v46, %v263_v46 }
 0x26c   :  { %266 = vst.msk [vmem:[%s435_s9] sm:$0xf] %vm265_vm2, %v264_v47 }

// kernel: my_network_mapper.13
= control target key start
LH: loop header
LB: loop body
LE: loop exit
PB: predicated region body
PF: predicated region fallthrough
CT: control target
= control target key end

     0   :  { %v249_v0 = vmov 0.0|0.0   ;;  %vm250_vm0 = vmmov 0   ;;  %v251_v4 = vmov 0.0   ;;  %vm33_vm1 = vcmask 261120   ;;  %s318_s1 = inlined_call_operand.vmem [shape: f32[32,32], index: 1, kind: input, shape index: {}]   ;;  %s319_s3 = inlined_call_operand.vmem [shape: f32[32,2], index: 3, kind: input, shape index: {}]   ;;  %s320_s0 = inlined_call_operand.vmem [shape: bf16[8,32], index: 0, kind: input, shape index: {}]   ;;  %s321_s2 = inlined_call_operand.vmem [shape: f32[1,32], index: 2, kind: input, shape index: {}]   ;;  %s322_s4 = inlined_call_operand.vmem [shape: f32[1,2], index: 4, kind: input, shape index: {}]   ;;  %s323_s5 = inlined_call_operand.vmem [shape: f32[8,2], index: 5, kind: output, shape index: {}]  }
   0x1   :  { %234 = vmatprep.subr.bf16.mxu0 %v249_v0  ;;  %v22_v1 = vld [vmem:[%s318_s1] sm:$0xff]  ;;  %v23_v2 = vld [vmem:[%s318_s1 + $0x8] sm:$0xff]  ;;  %v24_v3 = vld [vmem:[%s318_s1 + $0x10] sm:$0xff]  ;;  %220 = vmatprep.mubr.msk.f32.mxu0 %vm250_vm0, %v251_v4  ;;  %vm192_vm2 = vcmask 15360  }
   0x2   :  { %v235_v5 = vpack.c.bf16 %v23_v2, %v22_v1  ;;  %v25_v6 = vld [vmem:[%s318_s1 + $0x18] sm:$0xff]  ;;  %240 = vmatprep.subr.bf16.mxu1 %v249_v0  ;;  %v108_v7 = vld [vmem:[%s319_s3] sm:$0xff]  ;;  %231 = vmatprep.mubr.msk.f32.mxu1 %vm250_vm0, %v251_v4  ;;  %v109_v8 = vld [vmem:[%s319_s3 + $0x8] sm:$0xff] }
   0x3   :  { %v238_v9 = vpack.c.bf16 %v25_v6, %v24_v3  ;;  %v20_v10 = vld [vmem:[%s320_s0] sm:$0xf]  ;;  %v241_v11 = vpack.c.bf16 %v109_v8, %v108_v7  ;;  %v110_v13 = vld [vmem:[%s319_s3 + $0x10] sm:$0xff]  ;;  %v111_v14 = vld [vmem:[%s319_s3 + $0x18] sm:$0xff] }
   0x4   :  { %236 = vmatpush3.bf16.msra.mxu0 %v235_v5  ;;  %v21_v12 = vunpack.c.l.bf16 %v20_v10  ;;  %v244_v15 = vpack.c.bf16 %v111_v14, %v110_v13  ;;  %v198_v16 = vld [vmem:[%s321_s2] ss:$0 sm:$0xff] }
   0x5   :  { %237 = vmatprep.subr.bf16.mxu0 %v249_v0  ;;  %242 = vmatpush3.bf16.msra.mxu1 %v241_v11  ;;  %v200_v21 = vld [vmem:[%s322_s4] ss:$0 sm:$0xff] }
   0x6   :  { %243 = vmatprep.subr.bf16.mxu1 %v249_v0 }
   0x8   :  { %239 = vmatpush3.bf16.msra.mxu0 %v238_v9 }
   0x9   :  { %245 = vmatpush3.bf16.msra.mxu1 %v244_v15 }
   0xb   :  { %221 = vmatmul.mubr.msk.f32.vlgmr.msra.gmra.mrb[0].mxu0 %vm33_vm1, %v21_v12 }
  0xde   :  { %v103_v17 = vpop.f32.mrb[0].mxu0 }
  0xdf   :  { %v104_v18 = vadd.f32 %v198_v16, %v103_v17  ;;  %v222_v19 = vpop.f32.mrb[1].mxu0 }
  0xe1   :  { %v107_v20 = vmax.f32 %v104_v18, 0.0 }
  0xe3   :  { %232 = vmatmul.mubr.msk.f32.vlgmr.msra.gmra.mrb[0].mxu1 %vm33_vm1, %v107_v20 }
 0x1b6   :  { %v188_v22 = vpop.f32.mrb[0].mxu1 }
 0x1b7   :  { %v189_v23 = vadd.f32 %v200_v21, %v188_v22  ;;  %v233_v24 = vpop.f32.mrb[1].mxu1 }
 0x1b9   :  { %193 = vst.msk [vmem:[%s323_s5] sm:$0xff] %vm192_vm2, %v189_v23 }

</bundles_post_ra>
